<compile_context>
chip_gen: v7x
topology: tpu7x:2x2x1
jax: 0.10.0
libtpu: 0.0.40
codegen_flags: <defaults>
</compile_context>

<pallas_src>
import functools

import jax
import jax.numpy as jnp
from jax.experimental import pallas as pl
from jax.experimental.pallas import tpu as pltpu

LEAKY_SLOPE = 0.2
BN_EPS = 1e-5


def _round_up(v, m):
    return -(-v // m) * m


# ---------------------------------------------------------------------------
# Kernel 1: pairwise (negative squared) distances for k-NN.
#   pd[i, j] = 2 <x_i, x_j> - ||x_i||^2 - ||x_j||^2
# Squared norms are precomputed in the wrapper (hoisted out of the kernel).
# ---------------------------------------------------------------------------
def _pairwise_kernel(xq_ref, xk_ref, sqc_ref, sqr_ref, o_ref):
    xq = xq_ref[0]                                                   # (TM, C) bf16
    xk = xk_ref[0]                                                   # (Np, C) bf16
    g = jax.lax.dot_general(xq, xk, (((1,), (1,)), ((), ())),
                            preferred_element_type=jnp.float32)      # (TM, Np)
    o_ref[0] = 2.0 * g - sqc_ref[0] - sqr_ref[0]


def pairwise_neg_sqdist(x_bf, *, max_tile=256):
    """x_bf: (B, N, C) bf16.  Returns (B, Np, Np) f32 with padded key columns
    pushed to ~-1e30 so they are never selected by top_k."""
    B, N, C = x_bf.shape
    if N <= max_tile:
        Np = _round_up(N, 8)
        TM = Np
    else:
        Np = _round_up(N, max_tile)
        TM = max_tile
    MT = Np // TM

    sqn = jnp.sum(x_bf.astype(jnp.float32) ** 2, axis=-1)            # (B, N)
    xp = x_bf
    if Np != N:
        xp = jnp.pad(xp, ((0, 0), (0, Np - N), (0, 0)))
        sqn = jnp.pad(sqn, ((0, 0), (0, Np - N)), constant_values=1e30)
    sq_col = sqn.reshape(B, Np, 1)
    sq_row = sqn.reshape(B, 1, Np)

    return pl.pallas_call(
        _pairwise_kernel,
        out_shape=jax.ShapeDtypeStruct((B, Np, Np), jnp.float32),
        grid_spec=pltpu.PrefetchScalarGridSpec(
            num_scalar_prefetch=0,
            grid=(B, MT),
            in_specs=[
                pl.BlockSpec((1, TM, C), lambda b, m: (b, m, 0)),
                pl.BlockSpec((1, Np, C), lambda b, m: (b, 0, 0)),
                pl.BlockSpec((1, TM, 1), lambda b, m: (b, m, 0)),
                pl.BlockSpec((1, 1, Np), lambda b, m: (b, 0, 0)),
            ],
            out_specs=pl.BlockSpec((1, TM, Np), lambda b, m: (b, m, 0)),
        ),
        compiler_params=pltpu.CompilerParams(
            dimension_semantics=("parallel", "parallel")),
        cost_estimate=pl.CostEstimate(
            flops=2 * B * Np * Np * C,
            transcendentals=0,
            bytes_accessed=2 * B * Np * C * 2 + B * Np * Np * 4),
    )(xp, xp, sq_col, sq_row)


# ---------------------------------------------------------------------------
# Kernel 2: fused edge conv.  Single pass:
#   y = neigh @ Wa + center @ (Wb - Wa)          (f32 accumulation)
# producing, per row tile:
#   max_k y, min_k y           (for the exact post-hoc BN+LReLU+max)
#   sum y, sum y^2 partials    (for BN batch statistics)
# ---------------------------------------------------------------------------
def _edge_conv_kernel(neigh_ref, cen_ref, wa_ref, wd_ref,
                      maxo_ref, mino_ref, sum_ref, sq_ref):
    K, TR, C = neigh_ref.shape
    Coutp = wa_ref.shape[1]
    base = jnp.dot(cen_ref[...], wd_ref[...],
                   preferred_element_type=jnp.float32)               # (TR, Coutp)
    yk = jnp.dot(neigh_ref[...].reshape(K * TR, C), wa_ref[...],
                 preferred_element_type=jnp.float32)                 # (K*TR, Coutp)
    y = yk.reshape(K, TR, Coutp) + base[None, :, :]                  # (K, TR, Coutp)
    maxo_ref[...] = jnp.max(y, axis=0)
    mino_ref[...] = jnp.min(y, axis=0)
    yf = y.reshape((K * TR) // 8, 8, Coutp)                          # sublane groups
    sum_ref[...] = jnp.sum(yf, axis=0, keepdims=True)                # (1, 8, Coutp)
    sq_ref[...] = jnp.sum(yf * yf, axis=0, keepdims=True)


def _bn_lrelu_from_stats(maxo, mino, s, sq, count, gamma, beta):
    """Exact max-pool of BN+LeakyReLU from (max, min) of the raw conv output."""
    mean = s / count
    var = jnp.maximum(sq / count - mean * mean, 0.0)
    scale = gamma * jax.lax.rsqrt(var + BN_EPS)
    bias = beta - mean * scale
    ext = jnp.where(scale >= 0.0, maxo, mino)       # monotone affine: pick max/min
    z = ext * scale + bias
    return jnp.maximum(z, LEAKY_SLOPE * z)          # LeakyReLU (monotone)


def edge_conv(x_bnc, w, gamma, beta, k, *, row_tile=256):
    """One DGCNN edge-conv block: knn graph feature + 1x1 conv + BN(batch
    stats) + LeakyReLU + max over k neighbors.  Returns (B, N, Cout) bf16."""
    B, N, C = x_bnc.shape
    Cout = w.shape[1]
    Coutp = _round_up(Cout, 128)
    x_bf = x_bnc.astype(jnp.bfloat16)

    # ---- k-NN (Pallas pairwise kernel + top_k / gather glue) ----------------
    pd = pairwise_neg_sqdist(x_bf)                         # (B, Np, Np) f32
    _, idx = jax.lax.top_k(pd, k)                          # (B, Np, k)
    idx = idx[:, :N, :]                                    # drop padded query rows
    idx_t = jnp.transpose(idx, (2, 0, 1))                  # (k, B, N) small int array
    b_idx = jnp.arange(B)[None, :, None]
    neigh = x_bf[b_idx, idx_t].reshape(k, B * N, C)        # (k, R, C) bf16

    # ---- row / channel padding ----------------------------------------------
    R = B * N
    TR = _round_up(R, 8) if R <= row_tile else row_tile
    R_pad = _round_up(R, TR)
    RT = R_pad // TR
    cen = x_bf.reshape(R, C)
    if R_pad != R:
        neigh = jnp.pad(neigh, ((0, 0), (0, R_pad - R), (0, 0)))
        cen = jnp.pad(cen, ((0, R_pad - R), (0, 0)))

    wa = w[:C, :]                      # applied to gathered neighbor features
    wd = w[C:, :] - w[:C, :]           # applied to the center point
    if Coutp != Cout:
        wa = jnp.pad(wa, ((0, 0), (0, Coutp - Cout)))
        wd = jnp.pad(wd, ((0, 0), (0, Coutp - Cout)))
    wa = wa.astype(jnp.bfloat16)
    wd = wd.astype(jnp.bfloat16)

    maxo, mino, sum_p, sq_p = pl.pallas_call(
        _edge_conv_kernel,
        out_shape=(jax.ShapeDtypeStruct((R_pad, Coutp), jnp.float32),
                   jax.ShapeDtypeStruct((R_pad, Coutp), jnp.float32),
                   jax.ShapeDtypeStruct((RT, 8, Coutp), jnp.float32),
                   jax.ShapeDtypeStruct((RT, 8, Coutp), jnp.float32)),
        grid_spec=pltpu.PrefetchScalarGridSpec(
            num_scalar_prefetch=0,
            grid=(RT,),
            in_specs=[
                pl.BlockSpec((k, TR, C), lambda r: (0, r, 0)),
                pl.BlockSpec((TR, C), lambda r: (r, 0)),
                pl.BlockSpec((C, Coutp), lambda r: (0, 0),
                             pipeline_mode=pl.Buffered(1)),
                pl.BlockSpec((C, Coutp), lambda r: (0, 0),
                             pipeline_mode=pl.Buffered(1)),
            ],
            out_specs=(pl.BlockSpec((TR, Coutp), lambda r: (r, 0)),
                       pl.BlockSpec((TR, Coutp), lambda r: (r, 0)),
                       pl.BlockSpec((1, 8, Coutp), lambda r: (r, 0, 0)),
                       pl.BlockSpec((1, 8, Coutp), lambda r: (r, 0, 0))),
        ),
        compiler_params=pltpu.CompilerParams(
            dimension_semantics=("parallel",),
            vmem_limit_bytes=48 * 1024 * 1024),
        cost_estimate=pl.CostEstimate(
            flops=2 * (k + 1) * R_pad * C * Coutp,
            transcendentals=0,
            bytes_accessed=((k + 1) * R_pad * C * 2 + 2 * C * Coutp * 2
                            + 2 * R_pad * Coutp * 4)),
    )(neigh, cen, wa, wd)

    gamma_p = jnp.pad(gamma.reshape(-1), (0, Coutp - Cout), constant_values=1.0)
    beta_p = jnp.pad(beta.reshape(-1), (0, Coutp - Cout))
    s = jnp.sum(sum_p, axis=(0, 1))
    sq = jnp.sum(sq_p, axis=(0, 1))
    out = _bn_lrelu_from_stats(maxo, mino, s, sq, float(k * R), gamma_p, beta_p)
    return out[:R, :Cout].reshape(B, N, Cout).astype(jnp.bfloat16)


# ---------------------------------------------------------------------------
# Kernel 3: conv5 = Conv1d(512, emb) + BN1d + LeakyReLU + max-pool over N.
# Walks the (B, N, 512) layout directly (no HBM transpose); the pool axis N is
# the grid reduction axis; max/min/sum/sumsq accumulated in output blocks.
# ---------------------------------------------------------------------------
def _conv5_kernel(x_ref, w_ref, maxo_ref, mino_ref, sum_ref, sq_ref, *, n_true):
    TN = x_ref.shape[1]
    Coutp = w_ref.shape[1]
    nt = pl.program_id(1)
    y = jnp.dot(x_ref[0], w_ref[...],
                preferred_element_type=jnp.float32)                  # (TN, Coutp)
    ridx = jax.lax.broadcasted_iota(jnp.int32, (TN, 1), 0) + nt * TN
    valid = ridx < n_true                                            # mask padded rows
    ymax = jnp.where(valid, y, -jnp.inf).reshape(TN // 8, 8, Coutp)
    ymin = jnp.where(valid, y, jnp.inf).reshape(TN // 8, 8, Coutp)
    yf = y.reshape(TN // 8, 8, Coutp)                                # padded rows are 0
    pmax = jnp.max(ymax, axis=0, keepdims=True)                      # (1, 8, Coutp)
    pmin = jnp.min(ymin, axis=0, keepdims=True)
    psum = jnp.sum(yf, axis=0, keepdims=True)
    psq = jnp.sum(yf * yf, axis=0, keepdims=True)

    @pl.when(nt == 0)
    def _init():
        maxo_ref[...] = pmax
        mino_ref[...] = pmin
        sum_ref[...] = psum
        sq_ref[...] = psq

    @pl.when(nt != 0)
    def _acc():
        maxo_ref[...] = jnp.maximum(maxo_ref[...], pmax)
        mino_ref[...] = jnp.minimum(mino_ref[...], pmin)
        sum_ref[...] += psum
        sq_ref[...] += psq


def conv5_pool(xcat_bnc, w, gamma, beta, *, n_tile=256):
    B, N, Cin = xcat_bnc.shape
    Cout = w.shape[1]
    Coutp = _round_up(Cout, 128)
    TN = _round_up(N, 8) if N <= n_tile else n_tile
    N_pad = _round_up(N, TN)
    NT = N_pad // TN

    x_bf = xcat_bnc.astype(jnp.bfloat16)
    if N_pad != N:
        x_bf = jnp.pad(x_bf, ((0, 0), (0, N_pad - N), (0, 0)))
    w_p = w if Coutp == Cout else jnp.pad(w, ((0, 0), (0, Coutp - Cout)))
    w_bf = w_p.astype(jnp.bfloat16)

    maxo, mino, sum_p, sq_p = pl.pallas_call(
        functools.partial(_conv5_kernel, n_true=N),
        out_shape=(jax.ShapeDtypeStruct((B, 8, Coutp), jnp.float32),) * 4,
        grid_spec=pltpu.PrefetchScalarGridSpec(
            num_scalar_prefetch=0,
            grid=(B, NT),
            in_specs=[
                pl.BlockSpec((1, TN, Cin), lambda b, nt: (b, nt, 0)),
                pl.BlockSpec((Cin, Coutp), lambda b, nt: (0, 0),
                             pipeline_mode=pl.Buffered(1)),
            ],
            out_specs=(pl.BlockSpec((1, 8, Coutp), lambda b, nt: (b, 0, 0)),) * 4,
        ),
        compiler_params=pltpu.CompilerParams(
            dimension_semantics=("parallel", "arbitrary")),
        cost_estimate=pl.CostEstimate(
            flops=2 * B * N_pad * Cin * Coutp,
            transcendentals=0,
            bytes_accessed=(B * N_pad * Cin * 2 + Cin * Coutp * 2
                            + 4 * B * 8 * Coutp * 4)),
    )(x_bf, w_bf)

    gamma_p = jnp.pad(gamma.reshape(-1), (0, Coutp - Cout), constant_values=1.0)
    beta_p = jnp.pad(beta.reshape(-1), (0, Coutp - Cout))
    s = jnp.sum(sum_p, axis=(0, 1))
    sq = jnp.sum(sq_p, axis=(0, 1))
    maxr = jnp.max(maxo, axis=1)                            # (B, Coutp)
    minr = jnp.min(mino, axis=1)
    out = _bn_lrelu_from_stats(maxr, minr, s, sq, float(B * N), gamma_p, beta_p)
    return out[:, :Cout]


# ---------------------------------------------------------------------------
# Forward pass wiring.
# ---------------------------------------------------------------------------
def dgcnn_forward(points, params, k):
    # points: (B, N, 3)  ==  torch forward input after x.transpose(1, 2)
    x1 = edge_conv(points, params["w1"], params["g1"], params["b1"], k)   # 64
    x2 = edge_conv(x1, params["w2"], params["g2"], params["b2"], k)       # 64
    x3 = edge_conv(x2, params["w3"], params["g3"], params["b3"], k)       # 128
    x4 = edge_conv(x3, params["w4"], params["g4"], params["b4"], k)       # 256
    xcat = jnp.concatenate([x1, x2, x3, x4], axis=-1)                     # (B,N,512)
    return conv5_pool(xcat, params["w5"], params["g5"], params["b5"])     # (B,emb)


def init_params(key, emb_dims):
    # Conv weights stored as (Cin, Cout) == torch conv weight[:, :, 0, 0].T
    dims = [(6, 64), (128, 64), (128, 128), (256, 256), (512, emb_dims)]
    keys = jax.random.split(key, len(dims))
    p = {}
    for i, ((cin, cout), kk) in enumerate(zip(dims, keys), start=1):
        bound = 1.0 / (cin ** 0.5)                          # kaiming_uniform-style
        p[f"w{i}"] = jax.random.uniform(kk, (cin, cout), jnp.float32,
                                        -bound, bound)
        p[f"g{i}"] = jnp.ones((1, cout), jnp.float32)       # BN weight
        p[f"b{i}"] = jnp.zeros((1, cout), jnp.float32)      # BN bias
    return p


if __name__ == "__main__":
    B, N, K_NEIGH, EMB = 2, 16, 4, 64                       # small DGCNN(k=4, emb_dims=64)
    key = jax.random.PRNGKey(0)
    kx, kp = jax.random.split(key)
    x = jax.random.normal(kx, (B, N, 3), jnp.float32)       # (batch, num_points, 3)
    params = init_params(kp, EMB)

    fwd = jax.jit(functools.partial(dgcnn_forward, k=K_NEIGH))
    out = jax.block_until_ready(fwd(x, params))
    assert out.shape == (B, EMB), out.shape
    assert jnp.all(jnp.isfinite(out))
    print("KERNEL_OK")
</pallas_src>

<mosaic_0001>
module attributes {stable_mosaic.version = 11 : i64} {
  func.func @_pairwise_kernel(%arg0: i32, %arg1: i32, %arg2: memref<1x16x3xbf16, #tpu.memory_space<vmem>>, %arg3: memref<1x16x3xbf16, #tpu.memory_space<vmem>>, %arg4: memref<1x16x1xf32, #tpu.memory_space<vmem>>, %arg5: memref<1x1x16xf32, #tpu.memory_space<vmem>>, %arg6: memref<1x16x16xf32, #tpu.memory_space<vmem>>) attributes {dimension_semantics = [#tpu.dimension_semantics<parallel>, #tpu.dimension_semantics<parallel>], iteration_bounds = array<i64: 2, 1>, scalar_prefetch = 0 : i64, scratch_operands = 0 : i64, tpu.core_type = #tpu.core_type<tc>, window_params = [{transform_indices = @transform_0, window_bounds = array<i64: 1, 16, 3>}, {transform_indices = @transform_1, window_bounds = array<i64: 1, 16, 3>}, {transform_indices = @transform_2, window_bounds = array<i64: 1, 16, 1>}, {transform_indices = @transform_3, window_bounds = array<i64: 1, 1, 16>}, {transform_indices = @transform_4, window_bounds = array<i64: 1, 16, 16>}]} {
    %c0 = arith.constant 0 : index
    %c0_0 = arith.constant 0 : index
    %c0_1 = arith.constant 0 : index
    %0 = vector.load %arg2[%c0, %c0_0, %c0_1] : memref<1x16x3xbf16, #tpu.memory_space<vmem>>, vector<1x16x3xbf16>
    %1 = vector.shape_cast %0 : vector<1x16x3xbf16> to vector<16x3xbf16>
    %c0_2 = arith.constant 0 : index
    %c0_3 = arith.constant 0 : index
    %c0_4 = arith.constant 0 : index
    %2 = vector.load %arg3[%c0_2, %c0_3, %c0_4] : memref<1x16x3xbf16, #tpu.memory_space<vmem>>, vector<1x16x3xbf16>
    %3 = vector.shape_cast %2 : vector<1x16x3xbf16> to vector<16x3xbf16>
    %cst = arith.constant dense<0.000000e+00> : vector<16x16xf32>
    %4 = tpu.matmul %1, %3, %cst {dimension_numbers = #tpu.dot_dimension_numbers<[1], [1], [0], [0], [0, 0, 1, 0], [], []>} : vector<16x3xbf16>, vector<16x3xbf16>, vector<16x16xf32> -> vector<16x16xf32>
    %cst_5 = arith.constant 2.000000e+00 : f32
    %5 = vector.broadcast %cst_5 : f32 to vector<16x16xf32>
    %6 = arith.mulf %5, %4 : vector<16x16xf32>
    %c0_6 = arith.constant 0 : index
    %c0_7 = arith.constant 0 : index
    %c0_8 = arith.constant 0 : index
    %7 = vector.load %arg4[%c0_6, %c0_7, %c0_8] : memref<1x16x1xf32, #tpu.memory_space<vmem>>, vector<1x16x1xf32>
    %8 = vector.shape_cast %7 : vector<1x16x1xf32> to vector<16x1xf32>
    %9 = vector.broadcast %8 : vector<16x1xf32> to vector<16x16xf32>
    %10 = arith.subf %6, %9 : vector<16x16xf32>
    %c0_9 = arith.constant 0 : index
    %c0_10 = arith.constant 0 : index
    %c0_11 = arith.constant 0 : index
    %11 = vector.load %arg5[%c0_9, %c0_10, %c0_11] : memref<1x1x16xf32, #tpu.memory_space<vmem>>, vector<1x1x16xf32>
    %12 = vector.shape_cast %11 : vector<1x1x16xf32> to vector<1x16xf32>
    %13 = vector.broadcast %12 : vector<1x16xf32> to vector<16x16xf32>
    %14 = arith.subf %10, %13 : vector<16x16xf32>
    %c0_12 = arith.constant 0 : index
    %c0_13 = arith.constant 0 : index
    %c0_14 = arith.constant 0 : index
    %15 = vector.load %arg6[%c0_12, %c0_13, %c0_14] : memref<1x16x16xf32, #tpu.memory_space<vmem>>, vector<1x16x16xf32>
    %16 = vector.shape_cast %15 : vector<1x16x16xf32> to vector<16x16xf32>
    %17 = vector.shape_cast %14 : vector<16x16xf32> to vector<1x16x16xf32>
    tpu.vector_store %arg6[%c0_12, %c0_13, %c0_14], %17 {strides = array<i32>} : memref<1x16x16xf32, #tpu.memory_space<vmem>>, vector<1x16x16xf32>,
    return
  }
  func.func @transform_0(%arg0: i32, %arg1: i32) -> (i32, i32, i32) {
    %c0_i32 = arith.constant 0 : i32
    %c0_i32_0 = arith.constant 0 : i32
    return %arg0, %arg1, %c0_i32 : i32, i32, i32
  }
  func.func @transform_1(%arg0: i32, %arg1: i32) -> (i32, i32, i32) {
    %c0_i32 = arith.constant 0 : i32
    %c0_i32_0 = arith.constant 0 : i32
    %c0_i32_1 = arith.constant 0 : i32
    return %arg0, %c0_i32, %c0_i32_0 : i32, i32, i32
  }
  func.func @transform_2(%arg0: i32, %arg1: i32) -> (i32, i32, i32) {
    %c0_i32 = arith.constant 0 : i32
    %c0_i32_0 = arith.constant 0 : i32
    return %arg0, %arg1, %c0_i32 : i32, i32, i32
  }
  func.func @transform_3(%arg0: i32, %arg1: i32) -> (i32, i32, i32) {
    %c0_i32 = arith.constant 0 : i32
    %c0_i32_0 = arith.constant 0 : i32
    %c0_i32_1 = arith.constant 0 : i32
    return %arg0, %c0_i32, %c0_i32_0 : i32, i32, i32
  }
  func.func @transform_4(%arg0: i32, %arg1: i32) -> (i32, i32, i32) {
    %c0_i32 = arith.constant 0 : i32
    %c0_i32_0 = arith.constant 0 : i32
    return %arg0, %arg1, %c0_i32 : i32, i32, i32
  }
}

module attributes {stable_mosaic.version = 11 : i64} {
  func.func @_edge_conv_kernel(%arg0: i32, %arg1: memref<4x32x3xbf16, #tpu.memory_space<vmem>>, %arg2: memref<32x3xbf16, #tpu.memory_space<vmem>>, %arg3: memref<3x128xbf16, #tpu.memory_space<vmem>>, %arg4: memref<3x128xbf16, #tpu.memory_space<vmem>>, %arg5: memref<32x128xf32, #tpu.memory_space<vmem>>, %arg6: memref<32x128xf32, #tpu.memory_space<vmem>>, %arg7: memref<1x8x128xf32, #tpu.memory_space<vmem>>, %arg8: memref<1x8x128xf32, #tpu.memory_space<vmem>>) attributes {dimension_semantics = [#tpu.dimension_semantics<parallel>], iteration_bounds = array<i64: 1>, scalar_prefetch = 0 : i64, scratch_operands = 0 : i64, tpu.core_type = #tpu.core_type<tc>, window_params = [{transform_indices = @transform_0, window_bounds = array<i64: 4, 32, 3>}, {transform_indices = @transform_1, window_bounds = array<i64: 32, 3>}, {pipeline_mode = #tpu.pipeline_mode<synchronous>, transform_indices = @transform_2, window_bounds = array<i64: 3, 128>}, {pipeline_mode = #tpu.pipeline_mode<synchronous>, transform_indices = @transform_3, window_bounds = array<i64: 3, 128>}, {transform_indices = @transform_4, window_bounds = array<i64: 32, 128>}, {transform_indices = @transform_5, window_bounds = array<i64: 32, 128>}, {transform_indices = @transform_6, window_bounds = array<i64: 1, 8, 128>}, {transform_indices = @transform_7, window_bounds = array<i64: 1, 8, 128>}]} {
    %c0 = arith.constant 0 : index
    %c0_0 = arith.constant 0 : index
    %0 = vector.load %arg2[%c0, %c0_0] : memref<32x3xbf16, #tpu.memory_space<vmem>>, vector<32x3xbf16>
    %c0_1 = arith.constant 0 : index
    %c0_2 = arith.constant 0 : index
    %1 = vector.load %arg4[%c0_1, %c0_2] : memref<3x128xbf16, #tpu.memory_space<vmem>>, vector<3x128xbf16>
    %cst = arith.constant dense<0.000000e+00> : vector<32x128xf32>
    %2 = tpu.matmul %0, %1, %cst {dimension_numbers = #tpu.dot_dimension_numbers<[1], [0], [0], [1], [0, 0, 1, 1], [], []>} : vector<32x3xbf16>, vector<3x128xbf16>, vector<32x128xf32> -> vector<32x128xf32>
    %c0_3 = arith.constant 0 : index
    %c0_4 = arith.constant 0 : index
    %c0_5 = arith.constant 0 : index
    %3 = vector.load %arg1[%c0_3, %c0_4, %c0_5] : memref<4x32x3xbf16, #tpu.memory_space<vmem>>, vector<4x32x3xbf16>
    %4 = vector.shape_cast %3 : vector<4x32x3xbf16> to vector<128x3xbf16>
    %c0_6 = arith.constant 0 : index
    %c0_7 = arith.constant 0 : index
    %5 = vector.load %arg3[%c0_6, %c0_7] : memref<3x128xbf16, #tpu.memory_space<vmem>>, vector<3x128xbf16>
    %cst_8 = arith.constant dense<0.000000e+00> : vector<128x128xf32>
    %6 = tpu.matmul %4, %5, %cst_8 {dimension_numbers = #tpu.dot_dimension_numbers<[1], [0], [0], [1], [0, 0, 1, 1], [], []>} : vector<128x3xbf16>, vector<3x128xbf16>, vector<128x128xf32> -> vector<128x128xf32>
    %7 = vector.shape_cast %6 : vector<128x128xf32> to vector<4x32x128xf32>
    %8 = vector.shape_cast %2 : vector<32x128xf32> to vector<1x32x128xf32>
    %9 = vector.broadcast %8 : vector<1x32x128xf32> to vector<4x32x128xf32>
    %10 = arith.addf %7, %9 : vector<4x32x128xf32>
    %cst_9 = arith.constant dense<0xFF800000> : vector<32x128xf32>
    %11 = vector.multi_reduction <maximumf>, %10, %cst_9 [0] : vector<4x32x128xf32> to vector<32x128xf32>
    %c0_10 = arith.constant 0 : index
    %c0_11 = arith.constant 0 : index
    %12 = vector.load %arg5[%c0_10, %c0_11] : memref<32x128xf32, #tpu.memory_space<vmem>>, vector<32x128xf32>
    tpu.vector_store %arg5[%c0_10, %c0_11], %11 {strides = array<i32>} : memref<32x128xf32, #tpu.memory_space<vmem>>, vector<32x128xf32>,
    %cst_12 = arith.constant dense<0x7F800000> : vector<32x128xf32>
    %13 = vector.multi_reduction <minimumf>, %10, %cst_12 [0] : vector<4x32x128xf32> to vector<32x128xf32>
    %c0_13 = arith.constant 0 : index
    %c0_14 = arith.constant 0 : index
    %14 = vector.load %arg6[%c0_13, %c0_14] : memref<32x128xf32, #tpu.memory_space<vmem>>, vector<32x128xf32>
    tpu.vector_store %arg6[%c0_13, %c0_14], %13 {strides = array<i32>} : memref<32x128xf32, #tpu.memory_space<vmem>>, vector<32x128xf32>,
    %15 = vector.shape_cast %10 : vector<4x32x128xf32> to vector<16x8x128xf32>
    %cst_15 = arith.constant dense<0.000000e+00> : vector<8x128xf32>
    %16 = vector.multi_reduction <add>, %15, %cst_15 [0] : vector<16x8x128xf32> to vector<8x128xf32>
    %17 = vector.shape_cast %16 : vector<8x128xf32> to vector<1x8x128xf32>
    %c0_16 = arith.constant 0 : index
    %c0_17 = arith.constant 0 : index
    %c0_18 = arith.constant 0 : index
    %18 = vector.load %arg7[%c0_16, %c0_17, %c0_18] : memref<1x8x128xf32, #tpu.memory_space<vmem>>, vector<1x8x128xf32>
    tpu.vector_store %arg7[%c0_16, %c0_17, %c0_18], %17 {strides = array<i32>} : memref<1x8x128xf32, #tpu.memory_space<vmem>>, vector<1x8x128xf32>,
    %19 = arith.mulf %15, %15 : vector<16x8x128xf32>
    %cst_19 = arith.constant dense<0.000000e+00> : vector<8x128xf32>
    %20 = vector.multi_reduction <add>, %19, %cst_19 [0] : vector<16x8x128xf32> to vector<8x128xf32>
    %21 = vector.shape_cast %20 : vector<8x128xf32> to vector<1x8x128xf32>
    %c0_20 = arith.constant 0 : index
    %c0_21 = arith.constant 0 : index
    %c0_22 = arith.constant 0 : index
    %22 = vector.load %arg8[%c0_20, %c0_21, %c0_22] : memref<1x8x128xf32, #tpu.memory_space<vmem>>, vector<1x8x128xf32>
    tpu.vector_store %arg8[%c0_20, %c0_21, %c0_22], %21 {strides = array<i32>} : memref<1x8x128xf32, #tpu.memory_space<vmem>>, vector<1x8x128xf32>,
    return
  }
  func.func @transform_0(%arg0: i32) -> (i32, i32, i32) {
    %c0_i32 = arith.constant 0 : i32
    %c0_i32_0 = arith.constant 0 : i32
    %c0_i32_1 = arith.constant 0 : i32
    return %c0_i32, %arg0, %c0_i32_0 : i32, i32, i32
  }
  func.func @transform_1(%arg0: i32) -> (i32, i32) {
    %c0_i32 = arith.constant 0 : i32
    %c0_i32_0 = arith.constant 0 : i32
    return %arg0, %c0_i32 : i32, i32
  }
  func.func @transform_2(%arg0: i32) -> (i32, i32) {
    %c0_i32 = arith.constant 0 : i32
    %c0_i32_0 = arith.constant 0 : i32
    %c0_i32_1 = arith.constant 0 : i32
    return %c0_i32, %c0_i32_0 : i32, i32
  }
  func.func @transform_3(%arg0: i32) -> (i32, i32) {
    %c0_i32 = arith.constant 0 : i32
    %c0_i32_0 = arith.constant 0 : i32
    %c0_i32_1 = arith.constant 0 : i32
    return %c0_i32, %c0_i32_0 : i32, i32
  }
  func.func @transform_4(%arg0: i32) -> (i32, i32) {
    %c0_i32 = arith.constant 0 : i32
    %c0_i32_0 = arith.constant 0 : i32
    return %arg0, %c0_i32 : i32, i32
  }
  func.func @transform_5(%arg0: i32) -> (i32, i32) {
    %c0_i32 = arith.constant 0 : i32
    %c0_i32_0 = arith.constant 0 : i32
    return %arg0, %c0_i32 : i32, i32
  }
  func.func @transform_6(%arg0: i32) -> (i32, i32, i32) {
    %c0_i32 = arith.constant 0 : i32
    %c0_i32_0 = arith.constant 0 : i32
    %c0_i32_1 = arith.constant 0 : i32
    return %arg0, %c0_i32, %c0_i32_0 : i32, i32, i32
  }
  func.func @transform_7(%arg0: i32) -> (i32, i32, i32) {
    %c0_i32 = arith.constant 0 : i32
    %c0_i32_0 = arith.constant 0 : i32
    %c0_i32_1 = arith.constant 0 : i32
    return %arg0, %c0_i32, %c0_i32_0 : i32, i32, i32
  }
}

module attributes {stable_mosaic.version = 11 : i64} {
  func.func @_pairwise_kernel(%arg0: i32, %arg1: i32, %arg2: memref<1x16x64xbf16, #tpu.memory_space<vmem>>, %arg3: memref<1x16x64xbf16, #tpu.memory_space<vmem>>, %arg4: memref<1x16x1xf32, #tpu.memory_space<vmem>>, %arg5: memref<1x1x16xf32, #tpu.memory_space<vmem>>, %arg6: memref<1x16x16xf32, #tpu.memory_space<vmem>>) attributes {dimension_semantics = [#tpu.dimension_semantics<parallel>, #tpu.dimension_semantics<parallel>], iteration_bounds = array<i64: 2, 1>, scalar_prefetch = 0 : i64, scratch_operands = 0 : i64, tpu.core_type = #tpu.core_type<tc>, window_params = [{transform_indices = @transform_0, window_bounds = array<i64: 1, 16, 64>}, {transform_indices = @transform_1, window_bounds = array<i64: 1, 16, 64>}, {transform_indices = @transform_2, window_bounds = array<i64: 1, 16, 1>}, {transform_indices = @transform_3, window_bounds = array<i64: 1, 1, 16>}, {transform_indices = @transform_4, window_bounds = array<i64: 1, 16, 16>}]} {
    %c0 = arith.constant 0 : index
    %c0_0 = arith.constant 0 : index
    %c0_1 = arith.constant 0 : index
    %0 = vector.load %arg2[%c0, %c0_0, %c0_1] : memref<1x16x64xbf16, #tpu.memory_space<vmem>>, vector<1x16x64xbf16>
    %1 = vector.shape_cast %0 : vector<1x16x64xbf16> to vector<16x64xbf16>
    %c0_2 = arith.constant 0 : index
    %c0_3 = arith.constant 0 : index
    %c0_4 = arith.constant 0 : index
    %2 = vector.load %arg3[%c0_2, %c0_3, %c0_4] : memref<1x16x64xbf16, #tpu.memory_space<vmem>>, vector<1x16x64xbf16>
    %3 = vector.shape_cast %2 : vector<1x16x64xbf16> to vector<16x64xbf16>
    %cst = arith.constant dense<0.000000e+00> : vector<16x16xf32>
    %4 = tpu.matmul %1, %3, %cst {dimension_numbers = #tpu.dot_dimension_numbers<[1], [1], [0], [0], [0, 0, 1, 0], [], []>} : vector<16x64xbf16>, vector<16x64xbf16>, vector<16x16xf32> -> vector<16x16xf32>
    %cst_5 = arith.constant 2.000000e+00 : f32
    %5 = vector.broadcast %cst_5 : f32 to vector<16x16xf32>
    %6 = arith.mulf %5, %4 : vector<16x16xf32>
    %c0_6 = arith.constant 0 : index
    %c0_7 = arith.constant 0 : index
    %c0_8 = arith.constant 0 : index
    %7 = vector.load %arg4[%c0_6, %c0_7, %c0_8] : memref<1x16x1xf32, #tpu.memory_space<vmem>>, vector<1x16x1xf32>
    %8 = vector.shape_cast %7 : vector<1x16x1xf32> to vector<16x1xf32>
    %9 = vector.broadcast %8 : vector<16x1xf32> to vector<16x16xf32>
    %10 = arith.subf %6, %9 : vector<16x16xf32>
    %c0_9 = arith.constant 0 : index
    %c0_10 = arith.constant 0 : index
    %c0_11 = arith.constant 0 : index
    %11 = vector.load %arg5[%c0_9, %c0_10, %c0_11] : memref<1x1x16xf32, #tpu.memory_space<vmem>>, vector<1x1x16xf32>
    %12 = vector.shape_cast %11 : vector<1x1x16xf32> to vector<1x16xf32>
    %13 = vector.broadcast %12 : vector<1x16xf32> to vector<16x16xf32>
    %14 = arith.subf %10, %13 : vector<16x16xf32>
    %c0_12 = arith.constant 0 : index
    %c0_13 = arith.constant 0 : index
    %c0_14 = arith.constant 0 : index
    %15 = vector.load %arg6[%c0_12, %c0_13, %c0_14] : memref<1x16x16xf32, #tpu.memory_space<vmem>>, vector<1x16x16xf32>
    %16 = vector.shape_cast %15 : vector<1x16x16xf32> to vector<16x16xf32>
    %17 = vector.shape_cast %14 : vector<16x16xf32> to vector<1x16x16xf32>
    tpu.vector_store %arg6[%c0_12, %c0_13, %c0_14], %17 {strides = array<i32>} : memref<1x16x16xf32, #tpu.memory_space<vmem>>, vector<1x16x16xf32>,
    return
  }
  func.func @transform_0(%arg0: i32, %arg1: i32) -> (i32, i32, i32) {
    %c0_i32 = arith.constant 0 : i32
    %c0_i32_0 = arith.constant 0 : i32
    return %arg0, %arg1, %c0_i32 : i32, i32, i32
  }
  func.func @transform_1(%arg0: i32, %arg1: i32) -> (i32, i32, i32) {
    %c0_i32 = arith.constant 0 : i32
    %c0_i32_0 = arith.constant 0 : i32
    %c0_i32_1 = arith.constant 0 : i32
    return %arg0, %c0_i32, %c0_i32_0 : i32, i32, i32
  }
  func.func @transform_2(%arg0: i32, %arg1: i32) -> (i32, i32, i32) {
    %c0_i32 = arith.constant 0 : i32
    %c0_i32_0 = arith.constant 0 : i32
    return %arg0, %arg1, %c0_i32 : i32, i32, i32
  }
  func.func @transform_3(%arg0: i32, %arg1: i32) -> (i32, i32, i32) {
    %c0_i32 = arith.constant 0 : i32
    %c0_i32_0 = arith.constant 0 : i32
    %c0_i32_1 = arith.constant 0 : i32
    return %arg0, %c0_i32, %c0_i32_0 : i32, i32, i32
  }
  func.func @transform_4(%arg0: i32, %arg1: i32) -> (i32, i32, i32) {
    %c0_i32 = arith.constant 0 : i32
    %c0_i32_0 = arith.constant 0 : i32
    return %arg0, %arg1, %c0_i32 : i32, i32, i32
  }
}

module attributes {stable_mosaic.version = 11 : i64} {
  func.func @_edge_conv_kernel(%arg0: i32, %arg1: memref<4x32x64xbf16, #tpu.memory_space<vmem>>, %arg2: memref<32x64xbf16, #tpu.memory_space<vmem>>, %arg3: memref<64x128xbf16, #tpu.memory_space<vmem>>, %arg4: memref<64x128xbf16, #tpu.memory_space<vmem>>, %arg5: memref<32x128xf32, #tpu.memory_space<vmem>>, %arg6: memref<32x128xf32, #tpu.memory_space<vmem>>, %arg7: memref<1x8x128xf32, #tpu.memory_space<vmem>>, %arg8: memref<1x8x128xf32, #tpu.memory_space<vmem>>) attributes {dimension_semantics = [#tpu.dimension_semantics<parallel>], iteration_bounds = array<i64: 1>, scalar_prefetch = 0 : i64, scratch_operands = 0 : i64, tpu.core_type = #tpu.core_type<tc>, window_params = [{transform_indices = @transform_0, window_bounds = array<i64: 4, 32, 64>}, {transform_indices = @transform_1, window_bounds = array<i64: 32, 64>}, {pipeline_mode = #tpu.pipeline_mode<synchronous>, transform_indices = @transform_2, window_bounds = array<i64: 64, 128>}, {pipeline_mode = #tpu.pipeline_mode<synchronous>, transform_indices = @transform_3, window_bounds = array<i64: 64, 128>}, {transform_indices = @transform_4, window_bounds = array<i64: 32, 128>}, {transform_indices = @transform_5, window_bounds = array<i64: 32, 128>}, {transform_indices = @transform_6, window_bounds = array<i64: 1, 8, 128>}, {transform_indices = @transform_7, window_bounds = array<i64: 1, 8, 128>}]} {
    %c0 = arith.constant 0 : index
    %c0_0 = arith.constant 0 : index
    %0 = vector.load %arg2[%c0, %c0_0] : memref<32x64xbf16, #tpu.memory_space<vmem>>, vector<32x64xbf16>
    %c0_1 = arith.constant 0 : index
    %c0_2 = arith.constant 0 : index
    %1 = vector.load %arg4[%c0_1, %c0_2] : memref<64x128xbf16, #tpu.memory_space<vmem>>, vector<64x128xbf16>
    %cst = arith.constant dense<0.000000e+00> : vector<32x128xf32>
    %2 = tpu.matmul %0, %1, %cst {dimension_numbers = #tpu.dot_dimension_numbers<[1], [0], [0], [1], [0, 0, 1, 1], [], []>} : vector<32x64xbf16>, vector<64x128xbf16>, vector<32x128xf32> -> vector<32x128xf32>
    %c0_3 = arith.constant 0 : index
    %c0_4 = arith.constant 0 : index
    %c0_5 = arith.constant 0 : index
    %3 = vector.load %arg1[%c0_3, %c0_4, %c0_5] : memref<4x32x64xbf16, #tpu.memory_space<vmem>>, vector<4x32x64xbf16>
    %4 = vector.shape_cast %3 : vector<4x32x64xbf16> to vector<128x64xbf16>
    %c0_6 = arith.constant 0 : index
    %c0_7 = arith.constant 0 : index
    %5 = vector.load %arg3[%c0_6, %c0_7] : memref<64x128xbf16, #tpu.memory_space<vmem>>, vector<64x128xbf16>
    %cst_8 = arith.constant dense<0.000000e+00> : vector<128x128xf32>
    %6 = tpu.matmul %4, %5, %cst_8 {dimension_numbers = #tpu.dot_dimension_numbers<[1], [0], [0], [1], [0, 0, 1, 1], [], []>} : vector<128x64xbf16>, vector<64x128xbf16>, vector<128x128xf32> -> vector<128x128xf32>
    %7 = vector.shape_cast %6 : vector<128x128xf32> to vector<4x32x128xf32>
    %8 = vector.shape_cast %2 : vector<32x128xf32> to vector<1x32x128xf32>
    %9 = vector.broadcast %8 : vector<1x32x128xf32> to vector<4x32x128xf32>
    %10 = arith.addf %7, %9 : vector<4x32x128xf32>
    %cst_9 = arith.constant dense<0xFF800000> : vector<32x128xf32>
    %11 = vector.multi_reduction <maximumf>, %10, %cst_9 [0] : vector<4x32x128xf32> to vector<32x128xf32>
    %c0_10 = arith.constant 0 : index
    %c0_11 = arith.constant 0 : index
    %12 = vector.load %arg5[%c0_10, %c0_11] : memref<32x128xf32, #tpu.memory_space<vmem>>, vector<32x128xf32>
    tpu.vector_store %arg5[%c0_10, %c0_11], %11 {strides = array<i32>} : memref<32x128xf32, #tpu.memory_space<vmem>>, vector<32x128xf32>,
    %cst_12 = arith.constant dense<0x7F800000> : vector<32x128xf32>
    %13 = vector.multi_reduction <minimumf>, %10, %cst_12 [0] : vector<4x32x128xf32> to vector<32x128xf32>
    %c0_13 = arith.constant 0 : index
    %c0_14 = arith.constant 0 : index
    %14 = vector.load %arg6[%c0_13, %c0_14] : memref<32x128xf32, #tpu.memory_space<vmem>>, vector<32x128xf32>
    tpu.vector_store %arg6[%c0_13, %c0_14], %13 {strides = array<i32>} : memref<32x128xf32, #tpu.memory_space<vmem>>, vector<32x128xf32>,
    %15 = vector.shape_cast %10 : vector<4x32x128xf32> to vector<16x8x128xf32>
    %cst_15 = arith.constant dense<0.000000e+00> : vector<8x128xf32>
    %16 = vector.multi_reduction <add>, %15, %cst_15 [0] : vector<16x8x128xf32> to vector<8x128xf32>
    %17 = vector.shape_cast %16 : vector<8x128xf32> to vector<1x8x128xf32>
    %c0_16 = arith.constant 0 : index
    %c0_17 = arith.constant 0 : index
    %c0_18 = arith.constant 0 : index
    %18 = vector.load %arg7[%c0_16, %c0_17, %c0_18] : memref<1x8x128xf32, #tpu.memory_space<vmem>>, vector<1x8x128xf32>
    tpu.vector_store %arg7[%c0_16, %c0_17, %c0_18], %17 {strides = array<i32>} : memref<1x8x128xf32, #tpu.memory_space<vmem>>, vector<1x8x128xf32>,
    %19 = arith.mulf %15, %15 : vector<16x8x128xf32>
    %cst_19 = arith.constant dense<0.000000e+00> : vector<8x128xf32>
    %20 = vector.multi_reduction <add>, %19, %cst_19 [0] : vector<16x8x128xf32> to vector<8x128xf32>
    %21 = vector.shape_cast %20 : vector<8x128xf32> to vector<1x8x128xf32>
    %c0_20 = arith.constant 0 : index
    %c0_21 = arith.constant 0 : index
    %c0_22 = arith.constant 0 : index
    %22 = vector.load %arg8[%c0_20, %c0_21, %c0_22] : memref<1x8x128xf32, #tpu.memory_space<vmem>>, vector<1x8x128xf32>
    tpu.vector_store %arg8[%c0_20, %c0_21, %c0_22], %21 {strides = array<i32>} : memref<1x8x128xf32, #tpu.memory_space<vmem>>, vector<1x8x128xf32>,
    return
  }
  func.func @transform_0(%arg0: i32) -> (i32, i32, i32) {
    %c0_i32 = arith.constant 0 : i32
    %c0_i32_0 = arith.constant 0 : i32
    %c0_i32_1 = arith.constant 0 : i32
    return %c0_i32, %arg0, %c0_i32_0 : i32, i32, i32
  }
  func.func @transform_1(%arg0: i32) -> (i32, i32) {
    %c0_i32 = arith.constant 0 : i32
    %c0_i32_0 = arith.constant 0 : i32
    return %arg0, %c0_i32 : i32, i32
  }
  func.func @transform_2(%arg0: i32) -> (i32, i32) {
    %c0_i32 = arith.constant 0 : i32
    %c0_i32_0 = arith.constant 0 : i32
    %c0_i32_1 = arith.constant 0 : i32
    return %c0_i32, %c0_i32_0 : i32, i32
  }
  func.func @transform_3(%arg0: i32) -> (i32, i32) {
    %c0_i32 = arith.constant 0 : i32
    %c0_i32_0 = arith.constant 0 : i32
    %c0_i32_1 = arith.constant 0 : i32
    return %c0_i32, %c0_i32_0 : i32, i32
  }
  func.func @transform_4(%arg0: i32) -> (i32, i32) {
    %c0_i32 = arith.constant 0 : i32
    %c0_i32_0 = arith.constant 0 : i32
    return %arg0, %c0_i32 : i32, i32
  }
  func.func @transform_5(%arg0: i32) -> (i32, i32) {
    %c0_i32 = arith.constant 0 : i32
    %c0_i32_0 = arith.constant 0 : i32
    return %arg0, %c0_i32 : i32, i32
  }
  func.func @transform_6(%arg0: i32) -> (i32, i32, i32) {
    %c0_i32 = arith.constant 0 : i32
    %c0_i32_0 = arith.constant 0 : i32
    %c0_i32_1 = arith.constant 0 : i32
    return %arg0, %c0_i32, %c0_i32_0 : i32, i32, i32
  }
  func.func @transform_7(%arg0: i32) -> (i32, i32, i32) {
    %c0_i32 = arith.constant 0 : i32
    %c0_i32_0 = arith.constant 0 : i32
    %c0_i32_1 = arith.constant 0 : i32
    return %arg0, %c0_i32, %c0_i32_0 : i32, i32, i32
  }
}

module attributes {stable_mosaic.version = 11 : i64} {
  func.func @_pairwise_kernel(%arg0: i32, %arg1: i32, %arg2: memref<1x16x128xbf16, #tpu.memory_space<vmem>>, %arg3: memref<1x16x128xbf16, #tpu.memory_space<vmem>>, %arg4: memref<1x16x1xf32, #tpu.memory_space<vmem>>, %arg5: memref<1x1x16xf32, #tpu.memory_space<vmem>>, %arg6: memref<1x16x16xf32, #tpu.memory_space<vmem>>) attributes {dimension_semantics = [#tpu.dimension_semantics<parallel>, #tpu.dimension_semantics<parallel>], iteration_bounds = array<i64: 2, 1>, scalar_prefetch = 0 : i64, scratch_operands = 0 : i64, tpu.core_type = #tpu.core_type<tc>, window_params = [{transform_indices = @transform_0, window_bounds = array<i64: 1, 16, 128>}, {transform_indices = @transform_1, window_bounds = array<i64: 1, 16, 128>}, {transform_indices = @transform_2, window_bounds = array<i64: 1, 16, 1>}, {transform_indices = @transform_3, window_bounds = array<i64: 1, 1, 16>}, {transform_indices = @transform_4, window_bounds = array<i64: 1, 16, 16>}]} {
    %c0 = arith.constant 0 : index
    %c0_0 = arith.constant 0 : index
    %c0_1 = arith.constant 0 : index
    %0 = vector.load %arg2[%c0, %c0_0, %c0_1] : memref<1x16x128xbf16, #tpu.memory_space<vmem>>, vector<1x16x128xbf16>
    %1 = vector.shape_cast %0 : vector<1x16x128xbf16> to vector<16x128xbf16>
    %c0_2 = arith.constant 0 : index
    %c0_3 = arith.constant 0 : index
    %c0_4 = arith.constant 0 : index
    %2 = vector.load %arg3[%c0_2, %c0_3, %c0_4] : memref<1x16x128xbf16, #tpu.memory_space<vmem>>, vector<1x16x128xbf16>
    %3 = vector.shape_cast %2 : vector<1x16x128xbf16> to vector<16x128xbf16>
    %cst = arith.constant dense<0.000000e+00> : vector<16x16xf32>
    %4 = tpu.matmul %1, %3, %cst {dimension_numbers = #tpu.dot_dimension_numbers<[1], [1], [0], [0], [0, 0, 1, 0], [], []>} : vector<16x128xbf16>, vector<16x128xbf16>, vector<16x16xf32> -> vector<16x16xf32>
    %cst_5 = arith.constant 2.000000e+00 : f32
    %5 = vector.broadcast %cst_5 : f32 to vector<16x16xf32>
    %6 = arith.mulf %5, %4 : vector<16x16xf32>
    %c0_6 = arith.constant 0 : index
    %c0_7 = arith.constant 0 : index
    %c0_8 = arith.constant 0 : index
    %7 = vector.load %arg4[%c0_6, %c0_7, %c0_8] : memref<1x16x1xf32, #tpu.memory_space<vmem>>, vector<1x16x1xf32>
    %8 = vector.shape_cast %7 : vector<1x16x1xf32> to vector<16x1xf32>
    %9 = vector.broadcast %8 : vector<16x1xf32> to vector<16x16xf32>
    %10 = arith.subf %6, %9 : vector<16x16xf32>
    %c0_9 = arith.constant 0 : index
    %c0_10 = arith.constant 0 : index
    %c0_11 = arith.constant 0 : index
    %11 = vector.load %arg5[%c0_9, %c0_10, %c0_11] : memref<1x1x16xf32, #tpu.memory_space<vmem>>, vector<1x1x16xf32>
    %12 = vector.shape_cast %11 : vector<1x1x16xf32> to vector<1x16xf32>
    %13 = vector.broadcast %12 : vector<1x16xf32> to vector<16x16xf32>
    %14 = arith.subf %10, %13 : vector<16x16xf32>
    %c0_12 = arith.constant 0 : index
    %c0_13 = arith.constant 0 : index
    %c0_14 = arith.constant 0 : index
    %15 = vector.load %arg6[%c0_12, %c0_13, %c0_14] : memref<1x16x16xf32, #tpu.memory_space<vmem>>, vector<1x16x16xf32>
    %16 = vector.shape_cast %15 : vector<1x16x16xf32> to vector<16x16xf32>
    %17 = vector.shape_cast %14 : vector<16x16xf32> to vector<1x16x16xf32>
    tpu.vector_store %arg6[%c0_12, %c0_13, %c0_14], %17 {strides = array<i32>} : memref<1x16x16xf32, #tpu.memory_space<vmem>>, vector<1x16x16xf32>,
    return
  }
  func.func @transform_0(%arg0: i32, %arg1: i32) -> (i32, i32, i32) {
    %c0_i32 = arith.constant 0 : i32
    %c0_i32_0 = arith.constant 0 : i32
    return %arg0, %arg1, %c0_i32 : i32, i32, i32
  }
  func.func @transform_1(%arg0: i32, %arg1: i32) -> (i32, i32, i32) {
    %c0_i32 = arith.constant 0 : i32
    %c0_i32_0 = arith.constant 0 : i32
    %c0_i32_1 = arith.constant 0 : i32
    return %arg0, %c0_i32, %c0_i32_0 : i32, i32, i32
  }
  func.func @transform_2(%arg0: i32, %arg1: i32) -> (i32, i32, i32) {
    %c0_i32 = arith.constant 0 : i32
    %c0_i32_0 = arith.constant 0 : i32
    return %arg0, %arg1, %c0_i32 : i32, i32, i32
  }
  func.func @transform_3(%arg0: i32, %arg1: i32) -> (i32, i32, i32) {
    %c0_i32 = arith.constant 0 : i32
    %c0_i32_0 = arith.constant 0 : i32
    %c0_i32_1 = arith.constant 0 : i32
    return %arg0, %c0_i32, %c0_i32_0 : i32, i32, i32
  }
  func.func @transform_4(%arg0: i32, %arg1: i32) -> (i32, i32, i32) {
    %c0_i32 = arith.constant 0 : i32
    %c0_i32_0 = arith.constant 0 : i32
    return %arg0, %arg1, %c0_i32 : i32, i32, i32
  }
}

module attributes {stable_mosaic.version = 11 : i64} {
  func.func @_edge_conv_kernel(%arg0: i32, %arg1: memref<4x32x128xbf16, #tpu.memory_space<vmem>>, %arg2: memref<32x128xbf16, #tpu.memory_space<vmem>>, %arg3: memref<128x256xbf16, #tpu.memory_space<vmem>>, %arg4: memref<128x256xbf16, #tpu.memory_space<vmem>>, %arg5: memref<32x256xf32, #tpu.memory_space<vmem>>, %arg6: memref<32x256xf32, #tpu.memory_space<vmem>>, %arg7: memref<1x8x256xf32, #tpu.memory_space<vmem>>, %arg8: memref<1x8x256xf32, #tpu.memory_space<vmem>>) attributes {dimension_semantics = [#tpu.dimension_semantics<parallel>], iteration_bounds = array<i64: 1>, scalar_prefetch = 0 : i64, scratch_operands = 0 : i64, tpu.core_type = #tpu.core_type<tc>, window_params = [{transform_indices = @transform_0, window_bounds = array<i64: 4, 32, 128>}, {transform_indices = @transform_1, window_bounds = array<i64: 32, 128>}, {pipeline_mode = #tpu.pipeline_mode<synchronous>, transform_indices = @transform_2, window_bounds = array<i64: 128, 256>}, {pipeline_mode = #tpu.pipeline_mode<synchronous>, transform_indices = @transform_3, window_bounds = array<i64: 128, 256>}, {transform_indices = @transform_4, window_bounds = array<i64: 32, 256>}, {transform_indices = @transform_5, window_bounds = array<i64: 32, 256>}, {transform_indices = @transform_6, window_bounds = array<i64: 1, 8, 256>}, {transform_indices = @transform_7, window_bounds = array<i64: 1, 8, 256>}]} {
    %c0 = arith.constant 0 : index
    %c0_0 = arith.constant 0 : index
    %0 = vector.load %arg2[%c0, %c0_0] : memref<32x128xbf16, #tpu.memory_space<vmem>>, vector<32x128xbf16>
    %c0_1 = arith.constant 0 : index
    %c0_2 = arith.constant 0 : index
    %1 = vector.load %arg4[%c0_1, %c0_2] : memref<128x256xbf16, #tpu.memory_space<vmem>>, vector<128x256xbf16>
    %cst = arith.constant dense<0.000000e+00> : vector<32x256xf32>
    %2 = tpu.matmul %0, %1, %cst {dimension_numbers = #tpu.dot_dimension_numbers<[1], [0], [0], [1], [0, 0, 1, 1], [], []>} : vector<32x128xbf16>, vector<128x256xbf16>, vector<32x256xf32> -> vector<32x256xf32>
    %c0_3 = arith.constant 0 : index
    %c0_4 = arith.constant 0 : index
    %c0_5 = arith.constant 0 : index
    %3 = vector.load %arg1[%c0_3, %c0_4, %c0_5] : memref<4x32x128xbf16, #tpu.memory_space<vmem>>, vector<4x32x128xbf16>
    %4 = vector.shape_cast %3 : vector<4x32x128xbf16> to vector<128x128xbf16>
    %c0_6 = arith.constant 0 : index
    %c0_7 = arith.constant 0 : index
    %5 = vector.load %arg3[%c0_6, %c0_7] : memref<128x256xbf16, #tpu.memory_space<vmem>>, vector<128x256xbf16>
    %cst_8 = arith.constant dense<0.000000e+00> : vector<128x256xf32>
    %6 = tpu.matmul %4, %5, %cst_8 {dimension_numbers = #tpu.dot_dimension_numbers<[1], [0], [0], [1], [0, 0, 1, 1], [], []>} : vector<128x128xbf16>, vector<128x256xbf16>, vector<128x256xf32> -> vector<128x256xf32>
    %7 = vector.shape_cast %6 : vector<128x256xf32> to vector<4x32x256xf32>
    %8 = vector.shape_cast %2 : vector<32x256xf32> to vector<1x32x256xf32>
    %9 = vector.broadcast %8 : vector<1x32x256xf32> to vector<4x32x256xf32>
    %10 = arith.addf %7, %9 : vector<4x32x256xf32>
    %cst_9 = arith.constant dense<0xFF800000> : vector<32x256xf32>
    %11 = vector.multi_reduction <maximumf>, %10, %cst_9 [0] : vector<4x32x256xf32> to vector<32x256xf32>
    %c0_10 = arith.constant 0 : index
    %c0_11 = arith.constant 0 : index
    %12 = vector.load %arg5[%c0_10, %c0_11] : memref<32x256xf32, #tpu.memory_space<vmem>>, vector<32x256xf32>
    tpu.vector_store %arg5[%c0_10, %c0_11], %11 {strides = array<i32>} : memref<32x256xf32, #tpu.memory_space<vmem>>, vector<32x256xf32>,
    %cst_12 = arith.constant dense<0x7F800000> : vector<32x256xf32>
    %13 = vector.multi_reduction <minimumf>, %10, %cst_12 [0] : vector<4x32x256xf32> to vector<32x256xf32>
    %c0_13 = arith.constant 0 : index
    %c0_14 = arith.constant 0 : index
    %14 = vector.load %arg6[%c0_13, %c0_14] : memref<32x256xf32, #tpu.memory_space<vmem>>, vector<32x256xf32>
    tpu.vector_store %arg6[%c0_13, %c0_14], %13 {strides = array<i32>} : memref<32x256xf32, #tpu.memory_space<vmem>>, vector<32x256xf32>,
    %15 = vector.shape_cast %10 : vector<4x32x256xf32> to vector<16x8x256xf32>
    %cst_15 = arith.constant dense<0.000000e+00> : vector<8x256xf32>
    %16 = vector.multi_reduction <add>, %15, %cst_15 [0] : vector<16x8x256xf32> to vector<8x256xf32>
    %17 = vector.shape_cast %16 : vector<8x256xf32> to vector<1x8x256xf32>
    %c0_16 = arith.constant 0 : index
    %c0_17 = arith.constant 0 : index
    %c0_18 = arith.constant 0 : index
    %18 = vector.load %arg7[%c0_16, %c0_17, %c0_18] : memref<1x8x256xf32, #tpu.memory_space<vmem>>, vector<1x8x256xf32>
    tpu.vector_store %arg7[%c0_16, %c0_17, %c0_18], %17 {strides = array<i32>} : memref<1x8x256xf32, #tpu.memory_space<vmem>>, vector<1x8x256xf32>,
    %19 = arith.mulf %15, %15 : vector<16x8x256xf32>
    %cst_19 = arith.constant dense<0.000000e+00> : vector<8x256xf32>
    %20 = vector.multi_reduction <add>, %19, %cst_19 [0] : vector<16x8x256xf32> to vector<8x256xf32>
    %21 = vector.shape_cast %20 : vector<8x256xf32> to vector<1x8x256xf32>
    %c0_20 = arith.constant 0 : index
    %c0_21 = arith.constant 0 : index
    %c0_22 = arith.constant 0 : index
    %22 = vector.load %arg8[%c0_20, %c0_21, %c0_22] : memref<1x8x256xf32, #tpu.memory_space<vmem>>, vector<1x8x256xf32>
    tpu.vector_store %arg8[%c0_20, %c0_21, %c0_22], %21 {strides = array<i32>} : memref<1x8x256xf32, #tpu.memory_space<vmem>>, vector<1x8x256xf32>,
    return
  }
  func.func @transform_0(%arg0: i32) -> (i32, i32, i32) {
    %c0_i32 = arith.constant 0 : i32
    %c0_i32_0 = arith.constant 0 : i32
    %c0_i32_1 = arith.constant 0 : i32
    return %c0_i32, %arg0, %c0_i32_0 : i32, i32, i32
  }
  func.func @transform_1(%arg0: i32) -> (i32, i32) {
    %c0_i32 = arith.constant 0 : i32
    %c0_i32_0 = arith.constant 0 : i32
    return %arg0, %c0_i32 : i32, i32
  }
  func.func @transform_2(%arg0: i32) -> (i32, i32) {
    %c0_i32 = arith.constant 0 : i32
    %c0_i32_0 = arith.constant 0 : i32
    %c0_i32_1 = arith.constant 0 : i32
    return %c0_i32, %c0_i32_0 : i32, i32
  }
  func.func @transform_3(%arg0: i32) -> (i32, i32) {
    %c0_i32 = arith.constant 0 : i32
    %c0_i32_0 = arith.constant 0 : i32
    %c0_i32_1 = arith.constant 0 : i32
    return %c0_i32, %c0_i32_0 : i32, i32
  }
  func.func @transform_4(%arg0: i32) -> (i32, i32) {
    %c0_i32 = arith.constant 0 : i32
    %c0_i32_0 = arith.constant 0 : i32
    return %arg0, %c0_i32 : i32, i32
  }
  func.func @transform_5(%arg0: i32) -> (i32, i32) {
    %c0_i32 = arith.constant 0 : i32
    %c0_i32_0 = arith.constant 0 : i32
    return %arg0, %c0_i32 : i32, i32
  }
  func.func @transform_6(%arg0: i32) -> (i32, i32, i32) {
    %c0_i32 = arith.constant 0 : i32
    %c0_i32_0 = arith.constant 0 : i32
    %c0_i32_1 = arith.constant 0 : i32
    return %arg0, %c0_i32, %c0_i32_0 : i32, i32, i32
  }
  func.func @transform_7(%arg0: i32) -> (i32, i32, i32) {
    %c0_i32 = arith.constant 0 : i32
    %c0_i32_0 = arith.constant 0 : i32
    %c0_i32_1 = arith.constant 0 : i32
    return %arg0, %c0_i32, %c0_i32_0 : i32, i32, i32
  }
}

module attributes {stable_mosaic.version = 11 : i64} {
  func.func @_conv5_kernel(%arg0: i32, %arg1: i32, %arg2: memref<1x16x512xbf16, #tpu.memory_space<vmem>>, %arg3: memref<512x128xbf16, #tpu.memory_space<vmem>>, %arg4: memref<1x8x128xf32, #tpu.memory_space<vmem>>, %arg5: memref<1x8x128xf32, #tpu.memory_space<vmem>>, %arg6: memref<1x8x128xf32, #tpu.memory_space<vmem>>, %arg7: memref<1x8x128xf32, #tpu.memory_space<vmem>>) attributes {dimension_semantics = [#tpu.dimension_semantics<parallel>, #tpu.dimension_semantics<arbitrary>], iteration_bounds = array<i64: 2, 1>, scalar_prefetch = 0 : i64, scratch_operands = 0 : i64, tpu.core_type = #tpu.core_type<tc>, window_params = [{transform_indices = @transform_0, window_bounds = array<i64: 1, 16, 512>}, {pipeline_mode = #tpu.pipeline_mode<synchronous>, transform_indices = @transform_1, window_bounds = array<i64: 512, 128>}, {transform_indices = @transform_2, window_bounds = array<i64: 1, 8, 128>}, {transform_indices = @transform_3, window_bounds = array<i64: 1, 8, 128>}, {transform_indices = @transform_4, window_bounds = array<i64: 1, 8, 128>}, {transform_indices = @transform_5, window_bounds = array<i64: 1, 8, 128>}]} {
    %c0 = arith.constant 0 : index
    %c0_0 = arith.constant 0 : index
    %c0_1 = arith.constant 0 : index
    %0 = vector.load %arg2[%c0, %c0_0, %c0_1] : memref<1x16x512xbf16, #tpu.memory_space<vmem>>, vector<1x16x512xbf16>
    %1 = vector.shape_cast %0 : vector<1x16x512xbf16> to vector<16x512xbf16>
    %c0_2 = arith.constant 0 : index
    %c0_3 = arith.constant 0 : index
    %2 = vector.load %arg3[%c0_2, %c0_3] : memref<512x128xbf16, #tpu.memory_space<vmem>>, vector<512x128xbf16>
    %cst = arith.constant dense<0.000000e+00> : vector<16x128xf32>
    %3 = tpu.matmul %1, %2, %cst {dimension_numbers = #tpu.dot_dimension_numbers<[1], [0], [0], [1], [0, 0, 1, 1], [], []>} : vector<16x512xbf16>, vector<512x128xbf16>, vector<16x128xf32> -> vector<16x128xf32>
    %4 = tpu.iota {dimensions = array<i32: 0>} : vector<16x1xi32>
    %c16_i32 = arith.constant 16 : i32
    %5 = arith.muli %arg1, %c16_i32 : i32
    %6 = vector.broadcast %5 : i32 to vector<16x1xi32>
    %7 = arith.addi %4, %6 : vector<16x1xi32>
    %c16_i32_4 = arith.constant 16 : i32
    %8 = vector.broadcast %c16_i32_4 : i32 to vector<16x1xi32>
    %9 = arith.cmpi slt, %7, %8 : vector<16x1xi32>
    %cst_5 = arith.constant 0xFF800000 : f32
    %10 = vector.shape_cast %9 : vector<16x1xi1> to vector<16x1xi1>
    %11 = vector.broadcast %10 : vector<16x1xi1> to vector<16x128xi1>
    %12 = vector.broadcast %cst_5 : f32 to vector<16x128xf32>
    %13 = arith.select %11, %3, %12 : vector<16x128xi1>, vector<16x128xf32>
    %14 = vector.shape_cast %13 : vector<16x128xf32> to vector<2x8x128xf32>
    %cst_6 = arith.constant 0x7F800000 : f32
    %15 = vector.shape_cast %9 : vector<16x1xi1> to vector<16x1xi1>
    %16 = vector.broadcast %15 : vector<16x1xi1> to vector<16x128xi1>
    %17 = vector.broadcast %cst_6 : f32 to vector<16x128xf32>
    %18 = arith.select %16, %3, %17 : vector<16x128xi1>, vector<16x128xf32>
    %19 = vector.shape_cast %18 : vector<16x128xf32> to vector<2x8x128xf32>
    %20 = vector.shape_cast %3 : vector<16x128xf32> to vector<2x8x128xf32>
    %cst_7 = arith.constant dense<0xFF800000> : vector<8x128xf32>
    %21 = vector.multi_reduction <maximumf>, %14, %cst_7 [0] : vector<2x8x128xf32> to vector<8x128xf32>
    %22 = vector.shape_cast %21 : vector<8x128xf32> to vector<1x8x128xf32>
    %cst_8 = arith.constant dense<0x7F800000> : vector<8x128xf32>
    %23 = vector.multi_reduction <minimumf>, %19, %cst_8 [0] : vector<2x8x128xf32> to vector<8x128xf32>
    %24 = vector.shape_cast %23 : vector<8x128xf32> to vector<1x8x128xf32>
    %cst_9 = arith.constant dense<0.000000e+00> : vector<8x128xf32>
    %25 = vector.multi_reduction <add>, %20, %cst_9 [0] : vector<2x8x128xf32> to vector<8x128xf32>
    %26 = vector.shape_cast %25 : vector<8x128xf32> to vector<1x8x128xf32>
    %27 = arith.mulf %20, %20 : vector<2x8x128xf32>
    %cst_10 = arith.constant dense<0.000000e+00> : vector<8x128xf32>
    %28 = vector.multi_reduction <add>, %27, %cst_10 [0] : vector<2x8x128xf32> to vector<8x128xf32>
    %29 = vector.shape_cast %28 : vector<8x128xf32> to vector<1x8x128xf32>
    %c0_i32 = arith.constant 0 : i32
    %30 = arith.cmpi eq, %arg1, %c0_i32 : i32
    %31 = arith.extui %30 : i1 to i32
    %c0_i32_11 = arith.constant 0 : i32
    %32 = arith.cmpi ne, %31, %c0_i32_11 : i32
    scf.if %32 {
      %c0_14 = arith.constant 0 : index
      %c0_15 = arith.constant 0 : index
      %c0_16 = arith.constant 0 : index
      %36 = vector.load %arg4[%c0_14, %c0_15, %c0_16] : memref<1x8x128xf32, #tpu.memory_space<vmem>>, vector<1x8x128xf32>
      tpu.vector_store %arg4[%c0_14, %c0_15, %c0_16], %22 {strides = array<i32>} : memref<1x8x128xf32, #tpu.memory_space<vmem>>, vector<1x8x128xf32>,
      %c0_17 = arith.constant 0 : index
      %c0_18 = arith.constant 0 : index
      %c0_19 = arith.constant 0 : index
      %37 = vector.load %arg5[%c0_17, %c0_18, %c0_19] : memref<1x8x128xf32, #tpu.memory_space<vmem>>, vector<1x8x128xf32>
      tpu.vector_store %arg5[%c0_17, %c0_18, %c0_19], %24 {strides = array<i32>} : memref<1x8x128xf32, #tpu.memory_space<vmem>>, vector<1x8x128xf32>,
      %c0_20 = arith.constant 0 : index
      %c0_21 = arith.constant 0 : index
      %c0_22 = arith.constant 0 : index
      %38 = vector.load %arg6[%c0_20, %c0_21, %c0_22] : memref<1x8x128xf32, #tpu.memory_space<vmem>>, vector<1x8x128xf32>
      tpu.vector_store %arg6[%c0_20, %c0_21, %c0_22], %26 {strides = array<i32>} : memref<1x8x128xf32, #tpu.memory_space<vmem>>, vector<1x8x128xf32>,
      %c0_23 = arith.constant 0 : index
      %c0_24 = arith.constant 0 : index
      %c0_25 = arith.constant 0 : index
      %39 = vector.load %arg7[%c0_23, %c0_24, %c0_25] : memref<1x8x128xf32, #tpu.memory_space<vmem>>, vector<1x8x128xf32>
      tpu.vector_store %arg7[%c0_23, %c0_24, %c0_25], %29 {strides = array<i32>} : memref<1x8x128xf32, #tpu.memory_space<vmem>>, vector<1x8x128xf32>,
    } else {
    }
    %c0_i32_12 = arith.constant 0 : i32
    %33 = arith.cmpi ne, %arg1, %c0_i32_12 : i32
    %34 = arith.extui %33 : i1 to i32
    %c0_i32_13 = arith.constant 0 : i32
    %35 = arith.cmpi ne, %34, %c0_i32_13 : i32
    scf.if %35 {
      %c0_14 = arith.constant 0 : index
      %c0_15 = arith.constant 0 : index
      %c0_16 = arith.constant 0 : index
      %36 = vector.load %arg4[%c0_14, %c0_15, %c0_16] : memref<1x8x128xf32, #tpu.memory_space<vmem>>, vector<1x8x128xf32>
      %37 = arith.maximumf %36, %22 : vector<1x8x128xf32>
      %c0_17 = arith.constant 0 : index
      %c0_18 = arith.constant 0 : index
      %c0_19 = arith.constant 0 : index
      %38 = vector.load %arg4[%c0_17, %c0_18, %c0_19] : memref<1x8x128xf32, #tpu.memory_space<vmem>>, vector<1x8x128xf32>
      tpu.vector_store %arg4[%c0_17, %c0_18, %c0_19], %37 {strides = array<i32>} : memref<1x8x128xf32, #tpu.memory_space<vmem>>, vector<1x8x128xf32>,
      %c0_20 = arith.constant 0 : index
      %c0_21 = arith.constant 0 : index
      %c0_22 = arith.constant 0 : index
      %39 = vector.load %arg5[%c0_20, %c0_21, %c0_22] : memref<1x8x128xf32, #tpu.memory_space<vmem>>, vector<1x8x128xf32>
      %40 = arith.minimumf %39, %24 : vector<1x8x128xf32>
      %c0_23 = arith.constant 0 : index
      %c0_24 = arith.constant 0 : index
      %c0_25 = arith.constant 0 : index
      %41 = vector.load %arg5[%c0_23, %c0_24, %c0_25] : memref<1x8x128xf32, #tpu.memory_space<vmem>>, vector<1x8x128xf32>
      tpu.vector_store %arg5[%c0_23, %c0_24, %c0_25], %40 {strides = array<i32>} : memref<1x8x128xf32, #tpu.memory_space<vmem>>, vector<1x8x128xf32>,
      %c0_26 = arith.constant 0 : index
      %c0_27 = arith.constant 0 : index
      %c0_28 = arith.constant 0 : index
      %42 = vector.load %arg6[%c0_26, %c0_27, %c0_28] : memref<1x8x128xf32, #tpu.memory_space<vmem>>, vector<1x8x128xf32>
      %43 = arith.addf %42, %26 : vector<1x8x128xf32>
      %c0_29 = arith.constant 0 : index
      %c0_30 = arith.constant 0 : index
      %c0_31 = arith.constant 0 : index
      %44 = vector.load %arg6[%c0_29, %c0_30, %c0_31] : memref<1x8x128xf32, #tpu.memory_space<vmem>>, vector<1x8x128xf32>
      tpu.vector_store %arg6[%c0_29, %c0_30, %c0_31], %43 {strides = array<i32>} : memref<1x8x128xf32, #tpu.memory_space<vmem>>, vector<1x8x128xf32>,
      %c0_32 = arith.constant 0 : index
      %c0_33 = arith.constant 0 : index
      %c0_34 = arith.constant 0 : index
      %45 = vector.load %arg7[%c0_32, %c0_33, %c0_34] : memref<1x8x128xf32, #tpu.memory_space<vmem>>, vector<1x8x128xf32>
      %46 = arith.addf %45, %29 : vector<1x8x128xf32>
      %c0_35 = arith.constant 0 : index
      %c0_36 = arith.constant 0 : index
      %c0_37 = arith.constant 0 : index
      %47 = vector.load %arg7[%c0_35, %c0_36, %c0_37] : memref<1x8x128xf32, #tpu.memory_space<vmem>>, vector<1x8x128xf32>
      tpu.vector_store %arg7[%c0_35, %c0_36, %c0_37], %46 {strides = array<i32>} : memref<1x8x128xf32, #tpu.memory_space<vmem>>, vector<1x8x128xf32>,
    } else {
    }
    return
  }
  func.func @transform_0(%arg0: i32, %arg1: i32) -> (i32, i32, i32) {
    %c0_i32 = arith.constant 0 : i32
    %c0_i32_0 = arith.constant 0 : i32
    return %arg0, %arg1, %c0_i32 : i32, i32, i32
  }
  func.func @transform_1(%arg0: i32, %arg1: i32) -> (i32, i32) {
    %c0_i32 = arith.constant 0 : i32
    %c0_i32_0 = arith.constant 0 : i32
    %c0_i32_1 = arith.constant 0 : i32
    return %c0_i32, %c0_i32_0 : i32, i32
  }
  func.func @transform_2(%arg0: i32, %arg1: i32) -> (i32, i32, i32) {
    %c0_i32 = arith.constant 0 : i32
    %c0_i32_0 = arith.constant 0 : i32
    %c0_i32_1 = arith.constant 0 : i32
    return %arg0, %c0_i32, %c0_i32_0 : i32, i32, i32
  }
  func.func @transform_3(%arg0: i32, %arg1: i32) -> (i32, i32, i32) {
    %c0_i32 = arith.constant 0 : i32
    %c0_i32_0 = arith.constant 0 : i32
    %c0_i32_1 = arith.constant 0 : i32
    return %arg0, %c0_i32, %c0_i32_0 : i32, i32, i32
  }
  func.func @transform_4(%arg0: i32, %arg1: i32) -> (i32, i32, i32) {
    %c0_i32 = arith.constant 0 : i32
    %c0_i32_0 = arith.constant 0 : i32
    %c0_i32_1 = arith.constant 0 : i32
    return %arg0, %c0_i32, %c0_i32_0 : i32, i32, i32
  }
  func.func @transform_5(%arg0: i32, %arg1: i32) -> (i32, i32, i32) {
    %c0_i32 = arith.constant 0 : i32
    %c0_i32_0 = arith.constant 0 : i32
    %c0_i32_1 = arith.constant 0 : i32
    return %arg0, %c0_i32, %c0_i32_0 : i32, i32, i32
  }
}

</mosaic_0001>

<bundles_post_ra>
// kernel: dgcnn_forward.9
= control target key start
LH: loop header
LB: loop body
LE: loop exit
PB: predicated region body
PF: predicated region fallthrough
CT: control target
= control target key end

     0   :  { %s637_s15 = smov 0   ;;  %s639_s16 = smov 0   ;;  %s684_s0 = inlined_call_operand.vmem [shape: bf16[2,16,3], index: 0, kind: input, shape index: {}, may-alias: {0,1}]   ;;  %s685_s1 = inlined_call_operand.vmem [shape: bf16[2,16,3], index: 1, kind: input, shape index: {}, may-alias: {0,1}]   ;;  %s686_s2 = inlined_call_operand.vmem [shape: f32[2,16,1], index: 2, kind: input, shape index: {}]   ;;  %s687_s3 = inlined_call_operand.vmem [shape: f32[2,1,16], index: 3, kind: input, shape index: {}]   ;;  %s688_s4 = inlined_call_operand.vmem [shape: f32[2,16,16], index: 4, kind: output, shape index: {}]  }
   0x1   :  { %s641_s17 = smov 0  }
   0x2 LB: > { %s26_s18 = sadd.s32 1, %s603_s16  ;;  %p528_p0 = scmp.ge.s32.totalorder %s607_s17, 1  ;;  %s607_s17 = sphi %s641_s17, %s14_s17   ;;  %s603_s16 = sphi %s639_s16, %s690_s16   ;;  %s599_s15 = sphi %s637_s15, %s689_s15  }
   0x3   : > { %p28_p1 = scmp.ge.s32.totalorder %s26_s18, 2  ;;  %p218_p2 = scmp.lt.s32.totalorder %s607_s17, 3 }
   0x5   : > { %s692_s18 = smov (%p28_p1, %s26_s18), 0  ;;  %p219_p3 = pnand %p528_p0, %p218_p2 }
   0x6   : > { %p270_p4 = scmp.lt.s32.totalorder (!%p219_p3), %s599_s15, 1  ;;  %v609_v0 = vmov (!%p219_p3), 0.0   ;;  %vm610_vm0 = vmmov (!%p219_p3), 0   ;;  %v611_v1 = vmov (!%p219_p3), 0   ;;  %vm322_vm1 = vcmask (!%p219_p3), 23552  }
   0x7   : > { %222 = sbr.rel (%p219_p3) target bundleno = 247 (0xf7), region = 36  ;;  %549 = vmatprep.subr.bf16.mxu0 (!%p219_p3), %v609_v0  ;;  %551 = vmatprep.mubr.msk.bf16.mxu0 (!%p219_p3), %vm610_vm0, %v609_v0  ;;  %vm395_vm2 = vcmask (!%p219_p3), 130048  }
   0x8   : > { %582 = vset.pattern.permute.xlu0 (!%p219_p3), %v611_v1 }
   0xe   : > { %s694_s15 = smov (!%p270_p4, %s599_s15), 1 }
   0xf   : > { %s543_s19 = sshll.u32 %s694_s15, 3  ;;  %s545_s20 = sshll.u32 %s694_s15, 4 }
  0x10   : > { %s277_s23 = scalar_lea.vmem %s684_s0, %s543_s19  ;;  %s283_s26 = scalar_lea.vmem %s685_s1, %s543_s19 }
  0x11   : > { %s292_s29 = scalar_lea.vmem %s686_s2, %s545_s20  ;;  %v583_v2 = vld [vmem:[%s283_s26] sm:$0xff]   ;;  %s296_s6 = scalar_lea.vmem %s687_s3, %s694_s15 }
  0x12   : > { %v372_v3 = vld [vmem:[%s292_s29] sm:$0xff]  ;;  %v327_v4 = vsel %vm322_vm1, %v583_v2, 0  ;;  %v373_v5 = vld [vmem:[%s292_s29 + $0x8] sm:$0xff]  ;;  %s305_s9 = scalar_lea.vmem %s688_s4, %s545_s20 }
  0x13   : > { %376 = vperm.xlu0 %582, %v372_v3   ;;  %550 = vmatpush3.bf16.xpose.msra.mxu0 %v327_v4  ;;  %v584_v6 = vld [vmem:[%s277_s23] sm:$0xff]  }
  0x14   : > { %v540_v11 = vld [vmem:[%s296_s6] ss:$0 sm:$0xff] }
  0x17   : > { %381 = vperm.xlu0 %582, %v373_v5  }
  0x1a   : > { %552 = vmatmul.mubr.msk.bf16.vlgmr.msra.gmra.mrb[0].mxu0 %vm322_vm1, %v584_v6 }
  0x92   : > { %v377_v7 = vpop.permute.xlu0 %376 }
  0x96   : > { %v382_v16 = vpop.permute.xlu0 %381 }
  0xed   : > { %v363_v8 = vpop.f32.mrb[0].mxu0 }
  0xee   : > { %v370_v9 = vmul.f32 2.0, %v363_v8  ;;  %v553_v10 = vpop.f32.mrb[1].mxu0 }
  0xef   : > { %v366_v12 = vpop.f32.mrb[2].mxu0 }
  0xf0   : > { %v384_v13 = vsub.f32 %v370_v9, %v377_v7  ;;  %v371_v14 = vmul.f32 2.0, %v366_v12  ;;  %v554_v15 = vpop.f32.mrb[3].mxu0 }
  0xf2   : > { %v393_v17 = vsub.f32 %v384_v13, %v540_v11  ;;  %v385_v18 = vsub.f32 %v371_v14, %v382_v16 }
  0xf4   : > { %396 = vst.msk [vmem:[%s305_s9] sm:$0xff] %vm395_vm2, %v393_v17  ;;  %v394_v19 = vsub.f32 %v385_v18, %v540_v11 }
  0xf6   : > { %397 = vst.msk [vmem:[%s305_s9 + $0x8] sm:$0xff] %vm395_vm2, %v394_v19 }
  0xf7 PF: > { %s14_s17 = sadd.s32 1, %s607_s17   ;;  %s689_s15 = smov %s603_s16 }
  0xf8   : > { %p11_p5 = scmp.ge.s32.totalorder %s14_s17, 4   ;;  %s690_s16 = smov %s692_s18 }
  0xfa   :  { %13 = sbr.rel (!%p11_p5) target bundleno = 2 (0x2), region = 75 }

// kernel: dgcnn_forward.10
= control target key start
LH: loop header
LB: loop body
LE: loop exit
PB: predicated region body
PF: predicated region fallthrough
CT: control target
= control target key end

     0   :  { %vm44_vm0 = vcmask 1040384   ;;  %vm45_vm1 = vcmask 1041408   ;;  %vm37_vm2 = vcmask 23552   ;;  %v462_v1 = vmov 65535   ;;  %s635_s2 = inlined_call_operand.vmem [shape: bf16[3,128], index: 2, kind: input, shape index: {}]   ;;  %s636_s3 = inlined_call_operand.vmem [shape: bf16[3,128], index: 3, kind: input, shape index: {}]   ;;  %s637_s1 = inlined_call_operand.vmem [shape: bf16[32,3], index: 1, kind: input, shape index: {}]   ;;  %s638_s0 = inlined_call_operand.vmem [shape: bf16[4,32,3], index: 0, kind: input, shape index: {}]   ;;  %s639_s4 = inlined_call_operand.vmem [shape: f32[32,128], index: 4, kind: output, shape index: {0}]   ;;  %s640_s5 = inlined_call_operand.vmem [shape: f32[32,128], index: 5, kind: output, shape index: {1}]   ;;  %s641_s6 = inlined_call_operand.vmem [shape: f32[1,8,128], index: 6, kind: output, shape index: {2}]   ;;  %s642_s7 = inlined_call_operand.vmem [shape: f32[1,8,128], index: 7, kind: output, shape index: {3}]  }
   0x1   :  { %v26_v0 = vld [vmem:[%s636_s3] sm:$0x3]  ;;  %v46_v2 = vsel %vm44_vm0, 4294967295, %v462_v1  ;;  %v453_v6 = vld [vmem:[%s638_s0 + $0x10] sm:$0xff]   ;;  %v454_v9 = vld [vmem:[%s637_s1 + $0x8] sm:$0xff]  }
   0x2   :  { %v116_v3 = vld [vmem:[%s635_s2] sm:$0x3]  ;;  %v47_v5 = vsel %vm45_vm1, %v46_v2, 0  ;;  %437 = vmatprep.mubr.msk.bf16.mxu1 %vm37_vm2, %v453_v6  ;;  %v455_v10 = vld [vmem:[%s638_s0 + $0x18] sm:$0xff]   ;;  %v458_v13 = vld [vmem:[%s638_s0 + $0x8] sm:$0xff]  }
   0x3   :  { %v452_v4 = vld [vmem:[%s637_s1] sm:$0xff]   ;;  %v49_v7 = vand.u32 %v47_v5, %v26_v0  ;;  %v182_v8 = vand.u32 %v116_v3, %v47_v5  ;;  %v459_v14 = vld [vmem:[%s638_s0 + $0x28] sm:$0xff]   ;;  %v460_v15 = vld [vmem:[%s638_s0 + $0x30] sm:$0xff]  }
   0x4   :  { %427 = vmatprep.mubr.msk.bf16.mxu0 %vm37_vm2, %v452_v4  ;;  %v456_v11 = vld [vmem:[%s638_s0] sm:$0xff]   ;;  %v461_v16 = vld [vmem:[%s638_s0 + $0x38] sm:$0xff]  }
   0x5   :  { %425 = vmatprep.subr.bf16.mxu0 %v49_v7  ;;  %449 = vmatprep.subr.bf16.mxu1 %v182_v8  ;;  %v457_v12 = vld [vmem:[%s638_s0 + $0x20] sm:$0xff]  }
   0x6   :  { %426 = vmatpush3.bf16.msra.mxu0 %v49_v7  ;;  %450 = vmatpush3.bf16.msra.mxu1 %v182_v8 }
   0x7   :  { %431 = vmatprep.subr.bf16.mxu0 %v182_v8 }
   0x9   :  { %428 = vmatmul.mubr.msk.bf16.vlgmr.msra.gmra.mrb[0].mxu0 %vm37_vm2, %v454_v9  ;;  %438 = vmatmul.mubr.msk.bf16.vlgmr.msra.gmra.mrb[0].mxu1 %vm37_vm2, %v455_v10 }
   0xa   :  { %432 = vmatpush3.bf16.msra.mxu0 %v182_v8  ;;  %433 = vmatprep.mubr.msk.bf16.mxu0 %vm37_vm2, %v456_v11 }
   0xb   :  { %441 = vmatprep.mubr.msk.bf16.mxu1 %vm37_vm2, %v457_v12 }
  0x11   :  { %434 = vmatmul.mubr.msk.bf16.vlgmr.msra.gmra.mrb[4].mxu0 %vm37_vm2, %v458_v13  ;;  %442 = vmatmul.mubr.msk.bf16.gmra.mrb[4].mxu1 %vm37_vm2, %v459_v14 }
  0x12   :  { %445 = vmatprep.mubr.msk.bf16.mxu1 %vm37_vm2, %v460_v15 }
  0x19   :  { %446 = vmatmul.mubr.msk.bf16.gmra.mrb[8].mxu1 %vm37_vm2, %v461_v16 }
  0xdc   :  { %v429_v17 = vpop.f32.mrb[0].mxu0  ;;  %v439_v18 = vpop.f32.mrb[0].mxu1 }
  0xdd   :  { %v549_v19 = vadd.f32 %v439_v18, %v429_v17  ;;  %v85_v20 = vpop.f32.mrb[1].mxu0  ;;  %v234_v21 = vpop.f32.mrb[1].mxu1 }
  0xde   :  { %v551_v22 = vadd.f32 %v234_v21, %v85_v20  ;;  %v430_v23 = vpop.f32.mrb[2].mxu0  ;;  %v440_v24 = vpop.f32.mrb[2].mxu1 }
  0xdf   :  { %v553_v25 = vadd.f32 %v440_v24, %v430_v23  ;;  %v88_v26 = vpop.f32.mrb[3].mxu0  ;;  %v237_v27 = vpop.f32.mrb[3].mxu1 }
  0xe0   :  { %v555_v28 = vadd.f32 %v237_v27, %v88_v26  ;;  %v349_v16 = vmul.f32 %v551_v22, %v551_v22 }
  0xe4   :  { %v435_v29 = vpop.f32.mrb[4].mxu0  ;;  %v443_v30 = vpop.f32.mrb[4].mxu1 }
  0xe5   :  { %v283_v31 = vadd.f32 %v435_v29, %v429_v17  ;;  %v557_v32 = vadd.f32 %v443_v30, %v429_v17  ;;  %v218_v33 = vpop.f32.mrb[5].mxu0  ;;  %v250_v34 = vpop.f32.mrb[5].mxu1  ;;  %v350_v29 = vmul.f32 %v555_v28, %v555_v28 }
  0xe6   :  { %v281_v35 = vadd.f32 %v218_v33, %v85_v20  ;;  %v559_v36 = vadd.f32 %v250_v34, %v85_v20  ;;  %v436_v37 = vpop.f32.mrb[6].mxu0  ;;  %v444_v38 = vpop.f32.mrb[6].mxu1  ;;  %v352_v34 = vmul.f32 %v553_v25, %v553_v25 }
  0xe7   :  { %v303_v39 = vmax.f32 %v283_v31, %v549_v19  ;;  %v319_v40 = vmin.f32 %v283_v31, %v549_v19  ;;  %v221_v41 = vpop.f32.mrb[7].mxu0  ;;  %v253_v42 = vpop.f32.mrb[7].mxu1  ;;  %v284_v47 = vadd.f32 %v436_v37, %v430_v23  ;;  %v567_v48 = vadd.f32 %v444_v38, %v430_v23 }
  0xe8   :  { %v297_v43 = vmax.f32 %v281_v35, %v551_v22  ;;  %v313_v44 = vmin.f32 %v281_v35, %v551_v22  ;;  %v282_v51 = vadd.f32 %v221_v41, %v88_v26  ;;  %v290_v52 = vadd.f32 %v253_v42, %v88_v26 }
  0xe9   :  { %v304_v45 = vmax.f32 %v303_v39, %v557_v32  ;;  %v320_v46 = vmin.f32 %v319_v40, %v557_v32  ;;  %v345_v53 = vmul.f32 %v281_v35, %v281_v35  ;;  %v306_v54 = vmax.f32 %v284_v47, %v553_v25 }
  0xea   :  { %v298_v49 = vmax.f32 %v297_v43, %v559_v36  ;;  %v314_v50 = vmin.f32 %v313_v44, %v559_v36  ;;  %v322_v55 = vmin.f32 %v284_v47, %v553_v25  ;;  %v300_v56 = vmax.f32 %v282_v51, %v555_v28 }
  0xeb   :  { %v316_v57 = vmin.f32 %v282_v51, %v555_v28  ;;  %v329_v58 = vadd.f32 %v282_v51, %v281_v35  ;;  %v346_v59 = vmul.f32 %v282_v51, %v282_v51  ;;  %v347_v61 = vmul.f32 %v283_v31, %v283_v31 }
  0xec   :  { %v447_v60 = vpop.f32.mrb[8].mxu1  ;;  %v307_v62 = vmax.f32 %v306_v54, %v567_v48  ;;  %v323_v63 = vmin.f32 %v322_v55, %v567_v48  ;;  %v301_v4 = vmax.f32 %v300_v56, %v290_v52  ;;  %v348_v7 = vmul.f32 %v284_v47, %v284_v47 }
  0xed   :  { %v577_v0 = vadd.f32 %v447_v60, %v429_v17  ;;  %v266_v1 = vpop.f32.mrb[9].mxu1  ;;  %v330_v2 = vadd.f32 %v329_v58, %v283_v31  ;;  %v361_v3 = vadd.f32 %v346_v59, %v345_v53  ;;  %v317_v5 = vmin.f32 %v316_v57, %v290_v52 }
  0xee   :  { %v448_v6 = vpop.f32.mrb[10].mxu1  ;;  %v293_v10 = vadd.f32 %v266_v1, %v85_v20  ;;  %v353_v38 = vmul.f32 %v559_v36, %v559_v36  ;;  %v354_v42 = vmul.f32 %v290_v52, %v290_v52  ;;  %v355_v44 = vmul.f32 %v557_v32, %v557_v32 }
  0xef   :  { %v305_v8 = vmax.f32 %v304_v45, %v577_v0  ;;  %v321_v9 = vmin.f32 %v320_v46, %v577_v0  ;;  %v269_v11 = vpop.f32.mrb[11].mxu1  ;;  %v331_v12 = vadd.f32 %v330_v2, %v284_v47  ;;  %v362_v13 = vadd.f32 %v361_v3, %v347_v61 }
  0xf0   :  { %v296_v14 = vadd.f32 %v448_v6, %v430_v23  ;;  %v294_v15 = vadd.f32 %v269_v11, %v88_v26  ;;  %v299_v17 = vmax.f32 %v298_v49, %v293_v10  ;;  %v315_v18 = vmin.f32 %v314_v50, %v293_v10 }
  0xf1   :  { %311 = vst [vmem:[%s639_s4 + $0x10] sm:$0xff] %v305_v8  ;;  %327 = vst [vmem:[%s640_s5 + $0x10] sm:$0xff] %v321_v9  ;;  %v332_v20 = vadd.f32 %v331_v12, %v551_v22  ;;  %v363_v21 = vadd.f32 %v362_v13, %v348_v7  ;;  %v351_v22 = vmul.f32 %v549_v19, %v549_v19 }
  0xf2   :  { %v308_v24 = vmax.f32 %v307_v62, %v296_v14  ;;  %v324_v27 = vmin.f32 %v323_v63, %v296_v14  ;;  %309 = vst [vmem:[%s639_s4] sm:$0xff] %v299_v17  ;;  %325 = vst [vmem:[%s640_s5] sm:$0xff] %v315_v18  ;;  %v302_v23 = vmax.f32 %v301_v4, %v294_v15 }
  0xf3   :  { %v318_v26 = vmin.f32 %v317_v5, %v294_v15  ;;  %v364_v30 = vadd.f32 %v363_v21, %v349_v16  ;;  %v333_v31 = vadd.f32 %v332_v20, %v555_v28  ;;  %v356_v46 = vmul.f32 %v567_v48, %v567_v48 }
  0xf4   :  { %312 = vst [vmem:[%s639_s4 + $0x18] sm:$0xff] %v308_v24  ;;  %328 = vst [vmem:[%s640_s5 + $0x18] sm:$0xff] %v324_v27  ;;  %v357_v50 = vmul.f32 %v293_v10, %v293_v10  ;;  %v358_v54 = vmul.f32 %v294_v15, %v294_v15 }
  0xf5   :  { %310 = vst [vmem:[%s639_s4 + $0x8] sm:$0xff] %v302_v23  ;;  %326 = vst [vmem:[%s640_s5 + $0x8] sm:$0xff] %v318_v26  ;;  %v334_v28 = vadd.f32 %v333_v31, %v549_v19  ;;  %v365_v33 = vadd.f32 %v364_v30, %v350_v29 }
  0xf7   :  { %v335_v35 = vadd.f32 %v334_v28, %v553_v25  ;;  %v366_v37 = vadd.f32 %v365_v33, %v351_v22 }
  0xf9   :  { %v336_v39 = vadd.f32 %v335_v35, %v559_v36  ;;  %v367_v40 = vadd.f32 %v366_v37, %v352_v34 }
  0xfb   :  { %v337_v41 = vadd.f32 %v336_v39, %v290_v52  ;;  %v368_v43 = vadd.f32 %v367_v40, %v353_v38  ;;  %v359_v52 = vmul.f32 %v577_v0, %v577_v0 }
  0xfd   :  { %v338_v19 = vadd.f32 %v337_v41, %v557_v32  ;;  %v369_v45 = vadd.f32 %v368_v43, %v354_v42  ;;  %v360_v32 = vmul.f32 %v296_v14, %v296_v14 }
  0xff   :  { %v370_v25 = vadd.f32 %v369_v45, %v355_v44  ;;  %v339_v47 = vadd.f32 %v338_v19, %v567_v48 }
 0x101   :  { %v340_v49 = vadd.f32 %v339_v47, %v293_v10  ;;  %v371_v51 = vadd.f32 %v370_v25, %v356_v46 }
 0x103   :  { %v372_v36 = vadd.f32 %v371_v51, %v357_v50  ;;  %v341_v53 = vadd.f32 %v340_v49, %v294_v15 }
 0x105   :  { %v342_v55 = vadd.f32 %v341_v53, %v577_v0  ;;  %v373_v56 = vadd.f32 %v372_v36, %v358_v54 }
 0x107   :  { %v343_v57 = vadd.f32 %v342_v55, %v296_v14  ;;  %v374_v58 = vadd.f32 %v373_v56, %v359_v52 }
 0x109   :  { %344 = vst [vmem:[%s641_s6] sm:$0xff] %v343_v57  ;;  %v375_v48 = vadd.f32 %v374_v58, %v360_v32 }
 0x10b   :  { %376 = vst [vmem:[%s642_s7] sm:$0xff] %v375_v48 }

// kernel: dgcnn_forward.11
= control target key start
LH: loop header
LB: loop body
LE: loop exit
PB: predicated region body
PF: predicated region fallthrough
CT: control target
= control target key end

     0   :  { %s637_s15 = smov 0   ;;  %s639_s16 = smov 0   ;;  %s684_s0 = inlined_call_operand.vmem [shape: bf16[2,16,64], index: 0, kind: input, shape index: {}, may-alias: {0,1}]   ;;  %s685_s1 = inlined_call_operand.vmem [shape: bf16[2,16,64], index: 1, kind: input, shape index: {}, may-alias: {0,1}]   ;;  %s686_s2 = inlined_call_operand.vmem [shape: f32[2,16,1], index: 2, kind: input, shape index: {}]   ;;  %s687_s3 = inlined_call_operand.vmem [shape: f32[2,1,16], index: 3, kind: input, shape index: {}]   ;;  %s688_s4 = inlined_call_operand.vmem [shape: f32[2,16,16], index: 4, kind: output, shape index: {}]  }
   0x1   :  { %s641_s17 = smov 0  }
   0x2 LB: > { %s26_s18 = sadd.s32 1, %s603_s16  ;;  %p528_p0 = scmp.ge.s32.totalorder %s607_s17, 1  ;;  %s607_s17 = sphi %s641_s17, %s14_s17   ;;  %s603_s16 = sphi %s639_s16, %s690_s16   ;;  %s599_s15 = sphi %s637_s15, %s689_s15  }
   0x3   : > { %p28_p1 = scmp.ge.s32.totalorder %s26_s18, 2  ;;  %p218_p2 = scmp.lt.s32.totalorder %s607_s17, 3 }
   0x5   : > { %s692_s18 = smov (%p28_p1, %s26_s18), 0  ;;  %p219_p3 = pnand %p528_p0, %p218_p2 }
   0x6   : > { %p270_p4 = scmp.lt.s32.totalorder (!%p219_p3), %s599_s15, 1  ;;  %v609_v0 = vmov (!%p219_p3), 0.0   ;;  %vm610_vm0 = vmmov (!%p219_p3), 0   ;;  %v611_v1 = vmov (!%p219_p3), 0   ;;  %vm322_vm1 = vcmask (!%p219_p3), 523264  }
   0x7   : > { %222 = sbr.rel (%p219_p3) target bundleno = 247 (0xf7), region = 36  ;;  %549 = vmatprep.subr.bf16.mxu0 (!%p219_p3), %v609_v0  ;;  %551 = vmatprep.mubr.msk.bf16.mxu0 (!%p219_p3), %vm610_vm0, %v609_v0  ;;  %vm395_vm2 = vcmask (!%p219_p3), 130048  }
   0x8   : > { %582 = vset.pattern.permute.xlu0 (!%p219_p3), %v611_v1 }
   0xe   : > { %s694_s15 = smov (!%p270_p4, %s599_s15), 1 }
   0xf   : > { %s543_s19 = sshll.u32 %s694_s15, 3  ;;  %s545_s20 = sshll.u32 %s694_s15, 4 }
  0x10   : > { %s277_s23 = scalar_lea.vmem %s684_s0, %s543_s19  ;;  %s283_s26 = scalar_lea.vmem %s685_s1, %s543_s19 }
  0x11   : > { %s292_s29 = scalar_lea.vmem %s686_s2, %s545_s20  ;;  %v583_v2 = vld [vmem:[%s283_s26] sm:$0xff]   ;;  %s296_s6 = scalar_lea.vmem %s687_s3, %s694_s15 }
  0x12   : > { %v372_v3 = vld [vmem:[%s292_s29] sm:$0xff]  ;;  %v327_v4 = vsel %vm322_vm1, %v583_v2, 0  ;;  %v373_v5 = vld [vmem:[%s292_s29 + $0x8] sm:$0xff]  ;;  %s305_s9 = scalar_lea.vmem %s688_s4, %s545_s20 }
  0x13   : > { %376 = vperm.xlu0 %582, %v372_v3   ;;  %550 = vmatpush3.bf16.xpose.msra.mxu0 %v327_v4  ;;  %v584_v6 = vld [vmem:[%s277_s23] sm:$0xff]  }
  0x14   : > { %v540_v11 = vld [vmem:[%s296_s6] ss:$0 sm:$0xff] }
  0x17   : > { %381 = vperm.xlu0 %582, %v373_v5  }
  0x1a   : > { %552 = vmatmul.mubr.msk.bf16.vlgmr.msra.gmra.mrb[0].mxu0 %vm322_vm1, %v584_v6 }
  0x92   : > { %v377_v7 = vpop.permute.xlu0 %376 }
  0x96   : > { %v382_v16 = vpop.permute.xlu0 %381 }
  0xed   : > { %v363_v8 = vpop.f32.mrb[0].mxu0 }
  0xee   : > { %v370_v9 = vmul.f32 2.0, %v363_v8  ;;  %v553_v10 = vpop.f32.mrb[1].mxu0 }
  0xef   : > { %v366_v12 = vpop.f32.mrb[2].mxu0 }
  0xf0   : > { %v384_v13 = vsub.f32 %v370_v9, %v377_v7  ;;  %v371_v14 = vmul.f32 2.0, %v366_v12  ;;  %v554_v15 = vpop.f32.mrb[3].mxu0 }
  0xf2   : > { %v393_v17 = vsub.f32 %v384_v13, %v540_v11  ;;  %v385_v18 = vsub.f32 %v371_v14, %v382_v16 }
  0xf4   : > { %396 = vst.msk [vmem:[%s305_s9] sm:$0xff] %vm395_vm2, %v393_v17  ;;  %v394_v19 = vsub.f32 %v385_v18, %v540_v11 }
  0xf6   : > { %397 = vst.msk [vmem:[%s305_s9 + $0x8] sm:$0xff] %vm395_vm2, %v394_v19 }
  0xf7 PF: > { %s14_s17 = sadd.s32 1, %s607_s17   ;;  %s689_s15 = smov %s603_s16 }
  0xf8   : > { %p11_p5 = scmp.ge.s32.totalorder %s14_s17, 4   ;;  %s690_s16 = smov %s692_s18 }
  0xfa   :  { %13 = sbr.rel (!%p11_p5) target bundleno = 2 (0x2), region = 75 }

// kernel: dgcnn_forward.12
= control target key start
LH: loop header
LB: loop body
LE: loop exit
PB: predicated region body
PF: predicated region fallthrough
CT: control target
= control target key end

     0   :  { %vm68_vm0 = vcmask 523264   ;;  %s764_s3 = inlined_call_operand.vmem [shape: bf16[64,128], index: 3, kind: input, shape index: {}]   ;;  %s765_s2 = inlined_call_operand.vmem [shape: bf16[64,128], index: 2, kind: input, shape index: {}]   ;;  %s766_s1 = inlined_call_operand.vmem [shape: bf16[32,64], index: 1, kind: input, shape index: {}]   ;;  %s767_s0 = inlined_call_operand.vmem [shape: bf16[4,32,64], index: 0, kind: input, shape index: {}]   ;;  %s768_s4 = inlined_call_operand.vmem [shape: f32[32,128], index: 4, kind: output, shape index: {0}]   ;;  %s769_s5 = inlined_call_operand.vmem [shape: f32[32,128], index: 5, kind: output, shape index: {1}]   ;;  %s770_s6 = inlined_call_operand.vmem [shape: f32[1,8,128], index: 6, kind: output, shape index: {2}]   ;;  %s771_s7 = inlined_call_operand.vmem [shape: f32[1,8,128], index: 7, kind: output, shape index: {3}]  }
   0x1   :  { %v535_v0 = vld [vmem:[%s764_s3] sm:$0xff]   ;;  %v537_v2 = vld [vmem:[%s764_s3 + $0x8] sm:$0xff]   ;;  %v539_v4 = vld [vmem:[%s764_s3 + $0x10] sm:$0xff]  }
   0x2   :  { %v536_v1 = vld [vmem:[%s765_s2] sm:$0xff]   ;;  %491 = vmatprep.subr.bf16.mxu0 %v535_v0  ;;  %v538_v3 = vld [vmem:[%s765_s2 + $0x8] sm:$0xff]   ;;  %v540_v5 = vld [vmem:[%s765_s2 + $0x10] sm:$0xff]  }
   0x3   :  { %527 = vmatprep.subr.bf16.mxu1 %v536_v1  ;;  %492 = vmatpush3.bf16.msra.mxu0 %v535_v0  ;;  %v541_v6 = vld [vmem:[%s764_s3 + $0x18] sm:$0xff]   ;;  %v543_v8 = vld [vmem:[%s766_s1] sm:$0xff]   ;;  %v544_v9 = vld [vmem:[%s767_s0 + $0x10] sm:$0xff]  }
   0x4   :  { %531 = vmatpush3.bf16.msra.mxu1 %v536_v1  ;;  %493 = vmatprep.subr.bf16.mxu0 %v537_v2  ;;  %v542_v7 = vld [vmem:[%s765_s2 + $0x18] sm:$0xff]   ;;  %v545_v10 = vld [vmem:[%s766_s1 + $0x8] sm:$0xff]   ;;  %v547_v12 = vld [vmem:[%s767_s0 + $0x20] sm:$0xff]  }
   0x5   :  { %528 = vmatprep.subr.bf16.mxu1 %v538_v3  ;;  %499 = vmatprep.mubr.msk.bf16.mxu0 %vm68_vm0, %v543_v8  ;;  %v546_v11 = vld [vmem:[%s767_s0 + $0x18] sm:$0xff]   ;;  %v549_v13 = vld [vmem:[%s767_s0] sm:$0xff]   ;;  %v548_v14 = vld [vmem:[%s767_s0 + $0x28] sm:$0xff]  }
   0x6   :  { %515 = vmatprep.mubr.msk.bf16.mxu1 %vm68_vm0, %v544_v9  ;;  %v550_v15 = vld [vmem:[%s767_s0 + $0x30] sm:$0xff]   ;;  %v551_v16 = vld [vmem:[%s767_s0 + $0x8] sm:$0xff]   ;;  %v552_v17 = vld [vmem:[%s767_s0 + $0x38] sm:$0xff]  }
   0x7   :  { %494 = vmatpush3.bf16.msra.mxu0 %v537_v2 }
   0x8   :  { %532 = vmatpush3.bf16.msra.mxu1 %v538_v3  ;;  %495 = vmatprep.subr.bf16.mxu0 %v539_v4 }
   0x9   :  { %529 = vmatprep.subr.bf16.mxu1 %v540_v5 }
   0xb   :  { %496 = vmatpush3.bf16.msra.mxu0 %v539_v4 }
   0xc   :  { %533 = vmatpush3.bf16.msra.mxu1 %v540_v5  ;;  %497 = vmatprep.subr.bf16.mxu0 %v541_v6 }
   0xd   :  { %530 = vmatprep.subr.bf16.mxu1 %v542_v7 }
   0xf   :  { %498 = vmatpush3.bf16.msra.mxu0 %v541_v6 }
  0x10   :  { %534 = vmatpush3.bf16.msra.mxu1 %v542_v7  ;;  %503 = vmatprep.subr.bf16.mxu0 %v536_v1 }
  0x12   :  { %500 = vmatmul.mubr.msk.bf16.vlgmr.msra.gmra.mrb[0].mxu0 %vm68_vm0, %v545_v10 }
  0x13   :  { %516 = vmatmul.mubr.msk.bf16.vlgmr.msra.gmra.mrb[0].mxu1 %vm68_vm0, %v546_v11  ;;  %504 = vmatpush3.bf16.msra.mxu0 %v536_v1 }
  0x14   :  { %505 = vmatprep.subr.bf16.mxu0 %v538_v3  ;;  %519 = vmatprep.mubr.msk.bf16.mxu1 %vm68_vm0, %v547_v12 }
  0x15   :  { %511 = vmatprep.mubr.msk.bf16.mxu0 %vm68_vm0, %v549_v13 }
  0x17   :  { %506 = vmatpush3.bf16.msra.mxu0 %v538_v3 }
  0x18   :  { %507 = vmatprep.subr.bf16.mxu0 %v540_v5 }
  0x1b   :  { %520 = vmatmul.mubr.msk.bf16.gmra.mrb[4].mxu1 %vm68_vm0, %v548_v14  ;;  %508 = vmatpush3.bf16.msra.mxu0 %v540_v5 }
  0x1c   :  { %509 = vmatprep.subr.bf16.mxu0 %v542_v7  ;;  %523 = vmatprep.mubr.msk.bf16.mxu1 %vm68_vm0, %v550_v15 }
  0x1f   :  { %510 = vmatpush3.bf16.msra.mxu0 %v542_v7 }
  0x22   :  { %512 = vmatmul.mubr.msk.bf16.vlgmr.msra.gmra.mrb[4].mxu0 %vm68_vm0, %v551_v16 }
  0x23   :  { %524 = vmatmul.mubr.msk.bf16.gmra.mrb[8].mxu1 %vm68_vm0, %v552_v17 }
  0xe5   :  { %v501_v18 = vpop.f32.mrb[0].mxu0 }
  0xe6   :  { %v517_v19 = vpop.f32.mrb[0].mxu1  ;;  %v109_v20 = vpop.f32.mrb[1].mxu0 }
  0xe7   :  { %v657_v21 = vadd.f32 %v517_v19, %v501_v18  ;;  %v286_v22 = vpop.f32.mrb[1].mxu1  ;;  %v502_v23 = vpop.f32.mrb[2].mxu0 }
  0xe8   :  { %v659_v24 = vadd.f32 %v286_v22, %v109_v20  ;;  %v518_v25 = vpop.f32.mrb[2].mxu1  ;;  %v112_v26 = vpop.f32.mrb[3].mxu0 }
  0xe9   :  { %v661_v27 = vadd.f32 %v518_v25, %v502_v23  ;;  %v289_v28 = vpop.f32.mrb[3].mxu1 }
  0xea   :  { %v663_v29 = vadd.f32 %v289_v28, %v112_v26  ;;  %v401_v25 = vmul.f32 %v659_v24, %v659_v24 }
  0xee   :  { %v521_v30 = vpop.f32.mrb[4].mxu1 }
  0xef   :  { %v665_v31 = vadd.f32 %v521_v30, %v501_v18  ;;  %v302_v32 = vpop.f32.mrb[5].mxu1  ;;  %v402_v30 = vmul.f32 %v663_v29, %v663_v29 }
  0xf0   :  { %v667_v33 = vadd.f32 %v302_v32, %v109_v20  ;;  %v522_v34 = vpop.f32.mrb[6].mxu1 }
  0xf1   :  { %v669_v35 = vadd.f32 %v522_v34, %v502_v23  ;;  %v305_v36 = vpop.f32.mrb[7].mxu1 }
  0xf2   :  { %v671_v37 = vadd.f32 %v305_v36, %v112_v26  ;;  %v403_v36 = vmul.f32 %v657_v21, %v657_v21 }
  0xf5   :  { %v513_v38 = vpop.f32.mrb[4].mxu0 }
  0xf6   :  { %v335_v39 = vadd.f32 %v513_v38, %v501_v18  ;;  %v525_v40 = vpop.f32.mrb[8].mxu1  ;;  %v270_v41 = vpop.f32.mrb[5].mxu0 }
  0xf7   :  { %v673_v42 = vadd.f32 %v525_v40, %v501_v18  ;;  %v333_v43 = vadd.f32 %v270_v41, %v109_v20  ;;  %v318_v44 = vpop.f32.mrb[9].mxu1  ;;  %v514_v45 = vpop.f32.mrb[6].mxu0  ;;  %v404_v40 = vmul.f32 %v661_v27, %v661_v27 }
  0xf8   :  { %v355_v46 = vmax.f32 %v335_v39, %v657_v21  ;;  %v371_v47 = vmin.f32 %v335_v39, %v657_v21  ;;  %v677_v48 = vadd.f32 %v318_v44, %v109_v20  ;;  %v526_v49 = vpop.f32.mrb[10].mxu1  ;;  %v273_v50 = vpop.f32.mrb[7].mxu0  ;;  %v336_v56 = vadd.f32 %v514_v45, %v502_v23 }
  0xf9   :  { %v349_v51 = vmax.f32 %v333_v43, %v659_v24  ;;  %v365_v52 = vmin.f32 %v333_v43, %v659_v24  ;;  %v321_v53 = vpop.f32.mrb[11].mxu1  ;;  %v685_v59 = vadd.f32 %v526_v49, %v502_v23  ;;  %v334_v60 = vadd.f32 %v273_v50, %v112_v26 }
  0xfa   :  { %v356_v54 = vmax.f32 %v355_v46, %v665_v31  ;;  %v372_v55 = vmin.f32 %v371_v47, %v665_v31  ;;  %v358_v63 = vmax.f32 %v336_v56, %v661_v27  ;;  %v374_v0 = vmin.f32 %v336_v56, %v661_v27 }
  0xfb   :  { %v350_v57 = vmax.f32 %v349_v51, %v667_v33  ;;  %v366_v58 = vmin.f32 %v365_v52, %v667_v33  ;;  %v352_v5 = vmax.f32 %v334_v60, %v663_v29  ;;  %v368_v6 = vmin.f32 %v334_v60, %v663_v29 }
  0xfc   :  { %v357_v61 = vmax.f32 %v356_v54, %v673_v42  ;;  %v373_v62 = vmin.f32 %v372_v55, %v673_v42  ;;  %v359_v3 = vmax.f32 %v358_v63, %v669_v35  ;;  %v375_v4 = vmin.f32 %v374_v0, %v669_v35 }
  0xfd   :  { %v351_v1 = vmax.f32 %v350_v57, %v677_v48  ;;  %v367_v2 = vmin.f32 %v366_v58, %v677_v48  ;;  %v397_v7 = vmul.f32 %v333_v43, %v333_v43  ;;  %v381_v8 = vadd.f32 %v334_v60, %v333_v43 }
  0xfe   :  { %363 = vst [vmem:[%s768_s4 + $0x10] sm:$0xff] %v357_v61  ;;  %379 = vst [vmem:[%s769_s5 + $0x10] sm:$0xff] %v373_v62  ;;  %v398_v9 = vmul.f32 %v334_v60, %v334_v60  ;;  %v346_v10 = vadd.f32 %v321_v53, %v112_v26  ;;  %v360_v11 = vmax.f32 %v359_v3, %v685_v59 }
  0xff   :  { %361 = vst [vmem:[%s768_s4] sm:$0xff] %v351_v1  ;;  %377 = vst [vmem:[%s769_s5] sm:$0xff] %v367_v2  ;;  %v376_v12 = vmin.f32 %v375_v4, %v685_v59  ;;  %v353_v13 = vmax.f32 %v352_v5, %v671_v37  ;;  %v369_v14 = vmin.f32 %v368_v6, %v671_v37 }
 0x100   :  { %v399_v15 = vmul.f32 %v335_v39, %v335_v39  ;;  %v382_v16 = vadd.f32 %v381_v8, %v335_v39  ;;  %v413_v17 = vadd.f32 %v398_v9, %v397_v7  ;;  %364 = vst [vmem:[%s768_s4 + $0x18] sm:$0xff] %v360_v11  ;;  %v400_v20 = vmul.f32 %v336_v56, %v336_v56 }
 0x101   :  { %380 = vst [vmem:[%s769_s5 + $0x18] sm:$0xff] %v376_v12  ;;  %v354_v18 = vmax.f32 %v353_v13, %v346_v10  ;;  %v370_v19 = vmin.f32 %v369_v14, %v346_v10  ;;  %v410_v55 = vmul.f32 %v346_v10, %v346_v10  ;;  %v411_v57 = vmul.f32 %v673_v42, %v673_v42 }
 0x102   :  { %v383_v22 = vadd.f32 %v382_v16, %v336_v56  ;;  %v414_v23 = vadd.f32 %v413_v17, %v399_v15  ;;  %v412_v60 = vmul.f32 %v685_v59, %v685_v59 }
 0x103   :  { %362 = vst [vmem:[%s768_s4 + $0x8] sm:$0xff] %v354_v18  ;;  %378 = vst [vmem:[%s769_s5 + $0x8] sm:$0xff] %v370_v19 }
 0x104   :  { %v384_v26 = vadd.f32 %v383_v22, %v659_v24  ;;  %v415_v28 = vadd.f32 %v414_v23, %v400_v20  ;;  %v405_v24 = vmul.f32 %v667_v33, %v667_v33 }
 0x106   :  { %v385_v32 = vadd.f32 %v384_v26, %v663_v29  ;;  %v416_v34 = vadd.f32 %v415_v28, %v401_v25  ;;  %v406_v29 = vmul.f32 %v671_v37, %v671_v37 }
 0x108   :  { %v386_v38 = vadd.f32 %v385_v32, %v657_v21  ;;  %v417_v39 = vadd.f32 %v416_v34, %v402_v30  ;;  %v407_v21 = vmul.f32 %v665_v31, %v665_v31 }
 0x10a   :  { %v418_v41 = vadd.f32 %v417_v39, %v403_v36  ;;  %v387_v43 = vadd.f32 %v386_v38, %v661_v27  ;;  %v408_v27 = vmul.f32 %v669_v35, %v669_v35 }
 0x10c   :  { %v388_v44 = vadd.f32 %v387_v43, %v667_v33  ;;  %v419_v45 = vadd.f32 %v418_v41, %v404_v40  ;;  %v409_v33 = vmul.f32 %v677_v48, %v677_v48 }
 0x10e   :  { %v389_v46 = vadd.f32 %v388_v44, %v671_v37  ;;  %v420_v47 = vadd.f32 %v419_v45, %v405_v24 }
 0x110   :  { %v390_v49 = vadd.f32 %v389_v46, %v665_v31  ;;  %v421_v50 = vadd.f32 %v420_v47, %v406_v29 }
 0x112   :  { %v391_v51 = vadd.f32 %v390_v49, %v669_v35  ;;  %v422_v52 = vadd.f32 %v421_v50, %v407_v21 }
 0x114   :  { %v392_v53 = vadd.f32 %v391_v51, %v677_v48  ;;  %v423_v54 = vadd.f32 %v422_v52, %v408_v27 }
 0x116   :  { %v393_v37 = vadd.f32 %v392_v53, %v346_v10  ;;  %v424_v56 = vadd.f32 %v423_v54, %v409_v33 }
 0x118   :  { %v394_v31 = vadd.f32 %v393_v37, %v673_v42  ;;  %v425_v58 = vadd.f32 %v424_v56, %v410_v55 }
 0x11a   :  { %v395_v35 = vadd.f32 %v394_v31, %v685_v59  ;;  %v426_v61 = vadd.f32 %v425_v58, %v411_v57 }
 0x11c   :  { %396 = vst [vmem:[%s770_s6] sm:$0xff] %v395_v35  ;;  %v427_v48 = vadd.f32 %v426_v61, %v412_v60 }
 0x11e   :  { %428 = vst [vmem:[%s771_s7] sm:$0xff] %v427_v48 }

// kernel: dgcnn_forward.15
= control target key start
LH: loop header
LB: loop body
LE: loop exit
PB: predicated region body
PF: predicated region fallthrough
CT: control target
= control target key end

     0   :  { %s631_s15 = smov 0   ;;  %s633_s16 = smov 0   ;;  %s673_s0 = inlined_call_operand.vmem [shape: bf16[2,16,128], index: 0, kind: input, shape index: {}, may-alias: {0,1}]   ;;  %s674_s1 = inlined_call_operand.vmem [shape: bf16[2,16,128], index: 1, kind: input, shape index: {}, may-alias: {0,1}]   ;;  %s675_s2 = inlined_call_operand.vmem [shape: f32[2,16,1], index: 2, kind: input, shape index: {}]   ;;  %s676_s3 = inlined_call_operand.vmem [shape: f32[2,1,16], index: 3, kind: input, shape index: {}]   ;;  %s677_s4 = inlined_call_operand.vmem [shape: f32[2,16,16], index: 4, kind: output, shape index: {}]  }
   0x1   :  { %s635_s17 = smov 0  }
   0x2 LB: > { %s26_s18 = sadd.s32 1, %s597_s16  ;;  %p523_p0 = scmp.ge.s32.totalorder %s601_s17, 1  ;;  %s601_s17 = sphi %s635_s17, %s14_s17   ;;  %s597_s16 = sphi %s633_s16, %s679_s16   ;;  %s593_s15 = sphi %s631_s15, %s678_s15  }
   0x3   : > { %p28_p1 = scmp.ge.s32.totalorder %s26_s18, 2  ;;  %p218_p2 = scmp.lt.s32.totalorder %s601_s17, 3 }
   0x5   : > { %s681_s18 = smov (%p28_p1, %s26_s18), 0  ;;  %p219_p3 = pnand %p523_p0, %p218_p2 }
   0x6   : > { %p270_p4 = scmp.lt.s32.totalorder (!%p219_p3), %s593_s15, 1  ;;  %v603_v0 = vmov (!%p219_p3), 0.0   ;;  %vm604_vm0 = vmmov (!%p219_p3), 0   ;;  %v605_v1 = vmov (!%p219_p3), 0   ;;  %vm390_vm1 = vcmask (!%p219_p3), 130048  }
   0x7   : > { %222 = sbr.rel (%p219_p3) target bundleno = 246 (0xf6), region = 36  ;;  %543 = vmatprep.subr.bf16.mxu0 (!%p219_p3), %v603_v0  ;;  %545 = vmatprep.mubr.msk.bf16.mxu0 (!%p219_p3), %vm604_vm0, %v603_v0 }
   0x8   : > { %576 = vset.pattern.permute.xlu0 (!%p219_p3), %v605_v1 }
   0xe   : > { %s683_s15 = smov (!%p270_p4, %s593_s15), 1 }
   0xf   : > { %s537_s19 = sshll.u32 %s683_s15, 3  ;;  %s539_s20 = sshll.u32 %s683_s15, 4 }
  0x10   : > { %s283_s23 = scalar_lea.vmem %s674_s1, %s537_s19  ;;  %s277_s26 = scalar_lea.vmem %s673_s0, %s537_s19 }
  0x11   : > { %v577_v2 = vld [vmem:[%s283_s23] sm:$0xff]   ;;  %s292_s29 = scalar_lea.vmem %s675_s2, %s539_s20  ;;  %s296_s6 = scalar_lea.vmem %s676_s3, %s683_s15 }
  0x12   : > { %544 = vmatpush3.bf16.xpose.msra.mxu0 %v577_v2  ;;  %v367_v3 = vld [vmem:[%s292_s29] sm:$0xff]  ;;  %v368_v4 = vld [vmem:[%s292_s29 + $0x8] sm:$0xff]  ;;  %s305_s9 = scalar_lea.vmem %s677_s4, %s539_s20 }
  0x13   : > { %371 = vperm.xlu0 %576, %v367_v3   ;;  %v578_v5 = vld [vmem:[%s277_s26] sm:$0xff]  }
  0x14   : > { %v534_v10 = vld [vmem:[%s296_s6] ss:$0 sm:$0xff] }
  0x17   : > { %376 = vperm.xlu0 %576, %v368_v4  }
  0x19   : > { %546 = vmatmul.mubr.bf16.vlgmr.msra.gmra.mrb[0].mxu0 %v578_v5 }
  0x92   : > { %v372_v6 = vpop.permute.xlu0 %371 }
  0x96   : > { %v377_v15 = vpop.permute.xlu0 %376 }
  0xec   : > { %v358_v7 = vpop.f32.mrb[0].mxu0 }
  0xed   : > { %v365_v8 = vmul.f32 2.0, %v358_v7  ;;  %v547_v9 = vpop.f32.mrb[1].mxu0 }
  0xee   : > { %v361_v11 = vpop.f32.mrb[2].mxu0 }
  0xef   : > { %v379_v12 = vsub.f32 %v365_v8, %v372_v6  ;;  %v366_v13 = vmul.f32 2.0, %v361_v11  ;;  %v548_v14 = vpop.f32.mrb[3].mxu0 }
  0xf1   : > { %v388_v16 = vsub.f32 %v379_v12, %v534_v10  ;;  %v380_v17 = vsub.f32 %v366_v13, %v377_v15 }
  0xf3   : > { %391 = vst.msk [vmem:[%s305_s9] sm:$0xff] %vm390_vm1, %v388_v16  ;;  %v389_v18 = vsub.f32 %v380_v17, %v534_v10 }
  0xf5   : > { %392 = vst.msk [vmem:[%s305_s9 + $0x8] sm:$0xff] %vm390_vm1, %v389_v18 }
  0xf6 PF: > { %s14_s17 = sadd.s32 1, %s601_s17   ;;  %s678_s15 = smov %s597_s16 }
  0xf7   : > { %p11_p5 = scmp.ge.s32.totalorder %s14_s17, 4   ;;  %s679_s16 = smov %s681_s18 }
  0xf9   :  { %13 = sbr.rel (!%p11_p5) target bundleno = 2 (0x2), region = 75 }

// kernel: dgcnn_forward.16
= control target key start
LH: loop header
LB: loop body
LE: loop exit
PB: predicated region body
PF: predicated region fallthrough
CT: control target
= control target key end

     0   :  { %v785_v1 = vmov 0   ;;  %s1234_s3 = inlined_call_operand.vmem [shape: bf16[128,256], index: 3, kind: input, shape index: {}]   ;;  %s1235_s2 = inlined_call_operand.vmem [shape: bf16[128,256], index: 2, kind: input, shape index: {}]   ;;  %s1236_s1 = inlined_call_operand.vmem [shape: bf16[32,128], index: 1, kind: input, shape index: {}]   ;;  %s1237_s0 = inlined_call_operand.vmem [shape: bf16[4,32,128], index: 0, kind: input, shape index: {}]   ;;  %s1238_s4 = inlined_call_operand.vmem [shape: f32[32,256], index: 4, kind: output, shape index: {0}]   ;;  %s1239_s5 = inlined_call_operand.vmem [shape: f32[32,256], index: 5, kind: output, shape index: {1}]   ;;  %s1240_s6 = inlined_call_operand.vmem [shape: f32[1,8,256], index: 6, kind: output, shape index: {2}]   ;;  %s1241_s7 = inlined_call_operand.vmem [shape: f32[1,8,256], index: 7, kind: output, shape index: {3}]  }
   0x1   :  { %v727_v0 = vld [vmem:[%s1234_s3 + $0x4] ss:$8 sps:$4 sm:$0xff]   ;;  %166 = vmatprep.mubr.bf16.mxu0 %v785_v1  ;;  %399 = vmatprep.mubr.bf16.mxu1 %v785_v1  ;;  %v731_v3 = vld [vmem:[%s1234_s3] ss:$8 sps:$4 sm:$0xff]   ;;  %v733_v5 = vld [vmem:[%s1234_s3 + $0x14] ss:$8 sps:$4 sm:$0xff]  }
   0x2   :  { %v834_v2 = vld [vmem:[%s1235_s2 + $0x4] ss:$8 sps:$4 sm:$0xff]   ;;  %134 = vmatprep.subr.bf16.mxu0 %v727_v0  ;;  %v842_v4 = vld [vmem:[%s1235_s2] ss:$8 sps:$4 sm:$0xff]   ;;  %v852_v6 = vld [vmem:[%s1235_s2 + $0x14] ss:$8 sps:$4 sm:$0xff]  }
   0x3   :  { %710 = vmatprep.subr.bf16.mxu1 %v834_v2  ;;  %135 = vmatpush1.bf16.msra.mxu0 %v731_v3  ;;  %v737_v7 = vld [vmem:[%s1234_s3 + $0x10] ss:$8 sps:$4 sm:$0xff]   ;;  %v739_v9 = vld [vmem:[%s1234_s3 + $0x24] ss:$8 sps:$4 sm:$0xff]   ;;  %v743_v11 = vld [vmem:[%s1234_s3 + $0x20] ss:$8 sps:$4 sm:$0xff]  }
   0x4   :  { %718 = vmatpush1.bf16.msra.mxu1 %v842_v4  ;;  %136 = vmatprep.subr.bf16.mxu0 %v733_v5  ;;  %v860_v8 = vld [vmem:[%s1235_s2 + $0x10] ss:$8 sps:$4 sm:$0xff]   ;;  %v741_v10 = vld [vmem:[%s1235_s2 + $0x24] ss:$8 sps:$4 sm:$0xff]   ;;  %v875_v12 = vld [vmem:[%s1235_s2 + $0x20] ss:$8 sps:$4 sm:$0xff]  }
   0x5   :  { %711 = vmatprep.subr.bf16.mxu1 %v852_v6  ;;  %v745_v13 = vld [vmem:[%s1234_s3 + $0x34] ss:$8 sps:$4 sm:$0xff]   ;;  %v749_v15 = vld [vmem:[%s1234_s3 + $0x30] ss:$8 sps:$4 sm:$0xff]   ;;  %v751_v17 = vld [vmem:[%s1234_s3 + $0x44] ss:$8 sps:$4 sm:$0xff]  }
   0x6   :  { %v747_v14 = vld [vmem:[%s1235_s2 + $0x34] ss:$8 sps:$4 sm:$0xff]   ;;  %v750_v16 = vld [vmem:[%s1235_s2 + $0x30] ss:$8 sps:$4 sm:$0xff]   ;;  %v753_v18 = vld [vmem:[%s1235_s2 + $0x44] ss:$8 sps:$4 sm:$0xff]  }
   0x7   :  { %137 = vmatpush1.bf16.msra.mxu0 %v737_v7  ;;  %v755_v19 = vld [vmem:[%s1234_s3 + $0x40] ss:$8 sps:$4 sm:$0xff]   ;;  %v757_v21 = vld [vmem:[%s1234_s3 + $0x54] ss:$8 sps:$4 sm:$0xff]   ;;  %v761_v23 = vld [vmem:[%s1234_s3 + $0x50] ss:$8 sps:$4 sm:$0xff]  }
   0x8   :  { %719 = vmatpush1.bf16.msra.mxu1 %v860_v8  ;;  %138 = vmatprep.subr.bf16.mxu0 %v739_v9  ;;  %v756_v20 = vld [vmem:[%s1235_s2 + $0x40] ss:$8 sps:$4 sm:$0xff]   ;;  %v759_v22 = vld [vmem:[%s1235_s2 + $0x54] ss:$8 sps:$4 sm:$0xff]   ;;  %v762_v24 = vld [vmem:[%s1235_s2 + $0x50] ss:$8 sps:$4 sm:$0xff]  }
   0x9   :  { %712 = vmatprep.subr.bf16.mxu1 %v741_v10  ;;  %v763_v25 = vld [vmem:[%s1234_s3 + $0x64] ss:$8 sps:$4 sm:$0xff]   ;;  %v767_v27 = vld [vmem:[%s1234_s3 + $0x60] ss:$8 sps:$4 sm:$0xff]   ;;  %v769_v29 = vld [vmem:[%s1234_s3 + $0x74] ss:$8 sps:$4 sm:$0xff]  }
   0xa   :  { %v765_v26 = vld [vmem:[%s1235_s2 + $0x64] ss:$8 sps:$4 sm:$0xff]   ;;  %v768_v28 = vld [vmem:[%s1235_s2 + $0x60] ss:$8 sps:$4 sm:$0xff]   ;;  %v771_v30 = vld [vmem:[%s1235_s2 + $0x74] ss:$8 sps:$4 sm:$0xff]  }
   0xb   :  { %139 = vmatpush1.bf16.msra.mxu0 %v743_v11  ;;  %v773_v31 = vld [vmem:[%s1234_s3 + $0x70] ss:$8 sps:$4 sm:$0xff]   ;;  %v775_v33 = vld [vmem:[%s1236_s1] sm:$0xff]   ;;  %v779_v36 = vld [vmem:[%s1236_s1 + $0x8] sm:$0xff]  }
   0xc   :  { %720 = vmatpush1.bf16.msra.mxu1 %v875_v12  ;;  %140 = vmatprep.subr.bf16.mxu0 %v745_v13  ;;  %v774_v32 = vld [vmem:[%s1235_s2 + $0x70] ss:$8 sps:$4 sm:$0xff]   ;;  %v778_v37 = vld [vmem:[%s1237_s0 + $0x20] sm:$0xff]   ;;  %v780_v38 = vld [vmem:[%s1237_s0 + $0x28] sm:$0xff]  }
   0xd   :  { %713 = vmatprep.subr.bf16.mxu1 %v747_v14  ;;  %v776_v34 = vld [vmem:[%s1237_s0 + $0x10] sm:$0xff]   ;;  %v777_v35 = vld [vmem:[%s1237_s0 + $0x18] sm:$0xff]   ;;  %v781_v39 = vld [vmem:[%s1237_s0] sm:$0xff]  }
   0xe   :  { %v782_v40 = vld [vmem:[%s1237_s0 + $0x30] sm:$0xff]   ;;  %v783_v41 = vld [vmem:[%s1237_s0 + $0x8] sm:$0xff]   ;;  %v784_v42 = vld [vmem:[%s1237_s0 + $0x38] sm:$0xff]  }
   0xf   :  { %141 = vmatpush1.bf16.msra.mxu0 %v749_v15 }
  0x10   :  { %721 = vmatpush1.bf16.msra.mxu1 %v750_v16  ;;  %142 = vmatprep.subr.bf16.mxu0 %v751_v17 }
  0x11   :  { %714 = vmatprep.subr.bf16.mxu1 %v753_v18 }
  0x13   :  { %143 = vmatpush1.bf16.msra.mxu0 %v755_v19 }
  0x14   :  { %722 = vmatpush1.bf16.msra.mxu1 %v756_v20  ;;  %144 = vmatprep.subr.bf16.mxu0 %v757_v21 }
  0x15   :  { %715 = vmatprep.subr.bf16.mxu1 %v759_v22 }
  0x17   :  { %145 = vmatpush1.bf16.msra.mxu0 %v761_v23 }
  0x18   :  { %723 = vmatpush1.bf16.msra.mxu1 %v762_v24  ;;  %146 = vmatprep.subr.bf16.mxu0 %v763_v25 }
  0x19   :  { %716 = vmatprep.subr.bf16.mxu1 %v765_v26 }
  0x1b   :  { %147 = vmatpush1.bf16.msra.mxu0 %v767_v27 }
  0x1c   :  { %724 = vmatpush1.bf16.msra.mxu1 %v768_v28  ;;  %148 = vmatprep.subr.bf16.mxu0 %v769_v29 }
  0x1d   :  { %717 = vmatprep.subr.bf16.mxu1 %v771_v30 }
  0x1f   :  { %149 = vmatpush1.bf16.msra.mxu0 %v773_v31 }
  0x20   :  { %725 = vmatpush1.bf16.msra.mxu1 %v774_v32  ;;  %347 = vmatprep.subr.bf16.mxu0 %v834_v2 }
  0x22   :  { %167 = vmatmul.mubr.bf16.vlgmr.msra.gmra.mrb[0].mxu0 %v775_v33 }
  0x23   :  { %400 = vmatmul.mubr.bf16.vlgmr.msra.gmra.mrb[0].mxu1 %v776_v34  ;;  %348 = vmatpush1.bf16.msra.mxu0 %v842_v4 }
  0x24   :  { %409 = vmatprep.mubr.bf16.mxu1 %v785_v1  ;;  %349 = vmatprep.subr.bf16.mxu0 %v852_v6 }
  0x25   :  { %176 = vmatprep.mubr.bf16.mxu0 %v785_v1 }
  0x27   :  { %350 = vmatpush1.bf16.msra.mxu0 %v860_v8 }
  0x28   :  { %351 = vmatprep.subr.bf16.mxu0 %v741_v10 }
  0x2a   :  { %177 = vmatmul.mubr.bf16.gmra.mrb[4].mxu0 %v779_v36 }
  0x2b   :  { %410 = vmatmul.mubr.bf16.gmra.mrb[4].mxu1 %v777_v35  ;;  %352 = vmatpush1.bf16.msra.mxu0 %v875_v12 }
  0x2c   :  { %419 = vmatprep.mubr.bf16.mxu1 %v785_v1  ;;  %353 = vmatprep.subr.bf16.mxu0 %v747_v14 }
  0x2d   :  { %379 = vmatprep.mubr.bf16.mxu0 %v785_v1 }
  0x2f   :  { %354 = vmatpush1.bf16.msra.mxu0 %v750_v16 }
  0x30   :  { %355 = vmatprep.subr.bf16.mxu0 %v753_v18 }
  0x33   :  { %420 = vmatmul.mubr.bf16.gmra.mrb[8].mxu1 %v778_v37  ;;  %356 = vmatpush1.bf16.msra.mxu0 %v756_v20 }
  0x34   :  { %429 = vmatprep.mubr.bf16.mxu1 %v785_v1  ;;  %357 = vmatprep.subr.bf16.mxu0 %v759_v22 }
  0x37   :  { %358 = vmatpush1.bf16.msra.mxu0 %v762_v24 }
  0x38   :  { %359 = vmatprep.subr.bf16.mxu0 %v765_v26 }
  0x3b   :  { %430 = vmatmul.mubr.bf16.gmra.mrb[12].mxu1 %v780_v38  ;;  %360 = vmatpush1.bf16.msra.mxu0 %v768_v28 }
  0x3c   :  { %439 = vmatprep.mubr.bf16.mxu1 %v785_v1  ;;  %361 = vmatprep.subr.bf16.mxu0 %v771_v30 }
  0x3f   :  { %362 = vmatpush1.bf16.msra.mxu0 %v774_v32 }
  0x42   :  { %380 = vmatmul.mubr.bf16.vlgmr.msra.gmra.mrb[8].mxu0 %v781_v39 }
  0x43   :  { %440 = vmatmul.mubr.bf16.gmra.mrb[16].mxu1 %v782_v40  ;;  %389 = vmatprep.mubr.bf16.mxu0 %v785_v1 }
  0x44   :  { %449 = vmatprep.mubr.bf16.mxu1 %v785_v1 }
  0x4a   :  { %390 = vmatmul.mubr.bf16.gmra.mrb[12].mxu0 %v783_v41 }
  0x4b   :  { %450 = vmatmul.mubr.bf16.gmra.mrb[20].mxu1 %v784_v42 }
  0xf5   :  { %v168_v43 = vpop.f32.mrb[0].mxu0 }
  0xf6   :  { %v401_v44 = vpop.f32.mrb[0].mxu1  ;;  %v170_v46 = vpop.f32.mrb[1].mxu0 }
  0xf7   :  { %v982_v45 = vadd.f32 %v401_v44, %v168_v43  ;;  %v403_v47 = vpop.f32.mrb[1].mxu1  ;;  %v172_v49 = vpop.f32.mrb[2].mxu0 }
  0xf8   :  { %v984_v48 = vadd.f32 %v403_v47, %v170_v46  ;;  %v405_v50 = vpop.f32.mrb[2].mxu1  ;;  %v174_v52 = vpop.f32.mrb[3].mxu0 }
  0xf9   :  { %v986_v51 = vadd.f32 %v405_v50, %v172_v49  ;;  %v407_v53 = vpop.f32.mrb[3].mxu1 }
  0xfa   :  { %v988_v54 = vadd.f32 %v407_v53, %v174_v52 }
  0xfd   :  { %v990_v56 = vpop.f32.mrb[4].mxu0 }
  0xfe   :  { %v411_v55 = vpop.f32.mrb[4].mxu1  ;;  %v995_v59 = vpop.f32.mrb[5].mxu0 }
  0xff   :  { %v413_v57 = vpop.f32.mrb[5].mxu1  ;;  %v993_v58 = vadd.f32 %v411_v55, %v990_v56  ;;  %v1000_v62 = vpop.f32.mrb[6].mxu0 }
 0x100   :  { %v415_v60 = vpop.f32.mrb[6].mxu1  ;;  %v998_v61 = vadd.f32 %v413_v57, %v995_v59  ;;  %v1005_v1 = vpop.f32.mrb[7].mxu0 }
 0x101   :  { %v417_v63 = vpop.f32.mrb[7].mxu1  ;;  %v1003_v0 = vadd.f32 %v415_v60, %v1000_v62 }
 0x102   :  { %v1008_v2 = vadd.f32 %v417_v63, %v1005_v1 }
 0x106   :  { %v421_v3 = vpop.f32.mrb[8].mxu1 }
 0x107   :  { %v1010_v4 = vadd.f32 %v421_v3, %v168_v43  ;;  %v423_v5 = vpop.f32.mrb[9].mxu1 }
 0x108   :  { %v1012_v6 = vadd.f32 %v423_v5, %v170_v46  ;;  %v425_v7 = vpop.f32.mrb[10].mxu1 }
 0x109   :  { %v1014_v8 = vadd.f32 %v425_v7, %v172_v49  ;;  %v427_v9 = vpop.f32.mrb[11].mxu1 }
 0x10a   :  { %v1016_v10 = vadd.f32 %v427_v9, %v174_v52 }
 0x10e   :  { %v431_v11 = vpop.f32.mrb[12].mxu1 }
 0x10f   :  { %v1019_v12 = vadd.f32 %v431_v11, %v990_v56  ;;  %v433_v13 = vpop.f32.mrb[13].mxu1 }
 0x110   :  { %v1022_v14 = vadd.f32 %v433_v13, %v995_v59  ;;  %v435_v15 = vpop.f32.mrb[14].mxu1 }
 0x111   :  { %v1025_v16 = vadd.f32 %v435_v15, %v1000_v62  ;;  %v437_v17 = vpop.f32.mrb[15].mxu1 }
 0x112   :  { %v1028_v18 = vadd.f32 %v437_v17, %v1005_v1 }
 0x115   :  { %v381_v19 = vpop.f32.mrb[8].mxu0 }
 0x116   :  { %v441_v20 = vpop.f32.mrb[16].mxu1  ;;  %v460_v21 = vadd.f32 %v381_v19, %v168_v43  ;;  %v383_v23 = vpop.f32.mrb[9].mxu0 }
 0x117   :  { %v1030_v22 = vadd.f32 %v441_v20, %v168_v43  ;;  %v443_v24 = vpop.f32.mrb[17].mxu1  ;;  %v461_v25 = vadd.f32 %v383_v23, %v170_v46  ;;  %v385_v27 = vpop.f32.mrb[10].mxu0 }
 0x118   :  { %v1032_v26 = vadd.f32 %v443_v24, %v170_v46  ;;  %v445_v28 = vpop.f32.mrb[18].mxu1  ;;  %v492_v29 = vmax.f32 %v460_v21, %v982_v45  ;;  %v524_v30 = vmin.f32 %v460_v21, %v982_v45  ;;  %v387_v31 = vpop.f32.mrb[11].mxu0  ;;  %v588_v33 = vmul.f32 %v460_v21, %v460_v21 }
 0x119   :  { %v447_v32 = vpop.f32.mrb[19].mxu1  ;;  %v495_v34 = vmax.f32 %v461_v25, %v984_v48  ;;  %v527_v35 = vmin.f32 %v461_v25, %v984_v48  ;;  %v462_v38 = vadd.f32 %v385_v27, %v172_v49  ;;  %v1040_v39 = vadd.f32 %v445_v28, %v172_v49 }
 0x11a   :  { %v493_v36 = vmax.f32 %v492_v29, %v1010_v4  ;;  %v525_v37 = vmin.f32 %v524_v30, %v1010_v4  ;;  %v463_v42 = vadd.f32 %v387_v31, %v174_v52  ;;  %v1044_v43 = vadd.f32 %v447_v32, %v174_v52 }
 0x11b   :  { %v496_v40 = vmax.f32 %v495_v34, %v1012_v6  ;;  %v528_v41 = vmin.f32 %v527_v35, %v1012_v6  ;;  %v498_v47 = vmax.f32 %v462_v38, %v986_v51  ;;  %v530_v50 = vmin.f32 %v462_v38, %v986_v51 }
 0x11c   :  { %v494_v44 = vmax.f32 %v493_v36, %v1030_v22  ;;  %v526_v46 = vmin.f32 %v525_v37, %v1030_v22  ;;  %v556_v55 = vadd.f32 %v462_v38, %v460_v21  ;;  %v590_v57 = vmul.f32 %v462_v38, %v462_v38 }
 0x11d   :  { %v497_v53 = vmax.f32 %v496_v40, %v1032_v26  ;;  %v529_v49 = vmin.f32 %v528_v41, %v1032_v26  ;;  %v391_v60 = vpop.f32.mrb[12].mxu0  ;;  %v589_v52 = vmul.f32 %v461_v25, %v461_v25  ;;  %v499_v3 = vmax.f32 %v498_v47, %v1014_v8 }
 0x11e   :  { %v451_v63 = vpop.f32.mrb[20].mxu1  ;;  %516 = vst [vmem:[%s1238_s4] sm:$0xff] %v494_v44  ;;  %548 = vst [vmem:[%s1239_s5] sm:$0xff] %v526_v46  ;;  %v531_v5 = vmin.f32 %v530_v50, %v1014_v8  ;;  %v501_v7 = vmax.f32 %v463_v42, %v988_v54  ;;  %v393_v9 = vpop.f32.mrb[13].mxu0  ;;  %v620_v13 = vadd.f32 %v590_v57, %v588_v33 }
 0x11f   :  { %v453_v11 = vpop.f32.mrb[21].mxu1  ;;  %517 = vst [vmem:[%s1238_s4 + $0x8] sm:$0xff] %v497_v53  ;;  %549 = vst [vmem:[%s1239_s5 + $0x8] sm:$0xff] %v529_v49  ;;  %v533_v15 = vmin.f32 %v463_v42, %v988_v54  ;;  %v571_v17 = vadd.f32 %v463_v42, %v461_v25  ;;  %v591_v19 = vmul.f32 %v463_v42, %v463_v42  ;;  %v395_v20 = vpop.f32.mrb[14].mxu0 }
 0x120   :  { %v455_v21 = vpop.f32.mrb[22].mxu1  ;;  %v500_v23 = vmax.f32 %v499_v3, %v1040_v39  ;;  %v532_v24 = vmin.f32 %v531_v5, %v1040_v39  ;;  %v502_v27 = vmax.f32 %v501_v7, %v1016_v10  ;;  %v397_v28 = vpop.f32.mrb[15].mxu0  ;;  %v464_v32 = vadd.f32 %v391_v60, %v990_v56 }
 0x121   :  { %v457_v29 = vpop.f32.mrb[23].mxu1  ;;  %v635_v30 = vadd.f32 %v591_v19, %v589_v52  ;;  %v534_v31 = vmin.f32 %v533_v15, %v1016_v10  ;;  %v1074_v33 = vadd.f32 %v451_v63, %v990_v56  ;;  %v465_v34 = vadd.f32 %v393_v9, %v995_v59 }
 0x122   :  { %518 = vst [vmem:[%s1238_s4 + $0x10] sm:$0xff] %v500_v23  ;;  %550 = vst [vmem:[%s1239_s5 + $0x10] sm:$0xff] %v532_v24  ;;  %v503_v25 = vmax.f32 %v502_v27, %v1044_v43  ;;  %v1085_v35 = vadd.f32 %v453_v11, %v995_v59  ;;  %v466_v36 = vadd.f32 %v395_v20, %v1000_v62 }
 0x123   :  { %v535_v56 = vmin.f32 %v534_v31, %v1044_v43  ;;  %v504_v37 = vmax.f32 %v464_v32, %v993_v58  ;;  %v536_v38 = vmin.f32 %v464_v32, %v993_v58  ;;  %v557_v40 = vadd.f32 %v556_v55, %v464_v32 }
 0x124   :  { %519 = vst [vmem:[%s1238_s4 + $0x18] sm:$0xff] %v503_v25  ;;  %v592_v41 = vmul.f32 %v464_v32, %v464_v32  ;;  %v507_v42 = vmax.f32 %v465_v34, %v998_v61  ;;  %v539_v44 = vmin.f32 %v465_v34, %v998_v61  ;;  %v572_v47 = vadd.f32 %v571_v17, %v465_v34 }
 0x125   :  { %551 = vst [vmem:[%s1239_s5 + $0x18] sm:$0xff] %v535_v56  ;;  %v505_v59 = vmax.f32 %v504_v37, %v1019_v12  ;;  %v537_v46 = vmin.f32 %v536_v38, %v1019_v12  ;;  %v593_v50 = vmul.f32 %v465_v34, %v465_v34  ;;  %v510_v52 = vmax.f32 %v466_v36, %v1003_v0 }
 0x126   :  { %v621_v53 = vadd.f32 %v620_v13, %v592_v41  ;;  %v508_v49 = vmax.f32 %v507_v42, %v1022_v14  ;;  %v540_v55 = vmin.f32 %v539_v44, %v1022_v14  ;;  %v542_v7 = vmin.f32 %v466_v36, %v1003_v0 }
 0x127   :  { %v506_v57 = vmax.f32 %v505_v59, %v1074_v33  ;;  %v538_v60 = vmin.f32 %v537_v46, %v1074_v33  ;;  %v636_v63 = vadd.f32 %v635_v30, %v593_v50  ;;  %v558_v9 = vadd.f32 %v557_v40, %v466_v36 }
 0x128   :  { %v509_v3 = vmax.f32 %v508_v49, %v1085_v35  ;;  %v541_v5 = vmin.f32 %v540_v55, %v1085_v35  ;;  %v594_v11 = vmul.f32 %v466_v36, %v466_v36  ;;  %v1116_v13 = vadd.f32 %v455_v21, %v1000_v62 }
 0x129   :  { %520 = vst [vmem:[%s1238_s4 + $0x20] sm:$0xff] %v506_v57  ;;  %552 = vst [vmem:[%s1239_s5 + $0x20] sm:$0xff] %v538_v60  ;;  %v511_v15 = vmax.f32 %v510_v52, %v1025_v16  ;;  %v467_v17 = vadd.f32 %v397_v28, %v1005_v1  ;;  %v559_v19 = vadd.f32 %v558_v9, %v982_v45 }
 0x12a   :  { %521 = vst [vmem:[%s1238_s4 + $0x28] sm:$0xff] %v509_v3  ;;  %553 = vst [vmem:[%s1239_s5 + $0x28] sm:$0xff] %v541_v5  ;;  %v543_v20 = vmin.f32 %v542_v7, %v1025_v16  ;;  %v1129_v23 = vadd.f32 %v457_v29, %v1005_v1  ;;  %v596_v62 = vmul.f32 %v982_v45, %v982_v45 }
 0x12b   :  { %v622_v21 = vadd.f32 %v621_v53, %v594_v11  ;;  %v512_v24 = vmax.f32 %v511_v15, %v1116_v13  ;;  %v513_v27 = vmax.f32 %v467_v17, %v1008_v2  ;;  %v560_v28 = vadd.f32 %v559_v19, %v986_v51 }
 0x12c   :  { %v544_v30 = vmin.f32 %v543_v20, %v1116_v13  ;;  %v545_v31 = vmin.f32 %v467_v17, %v1008_v2  ;;  %v573_v32 = vadd.f32 %v572_v47, %v467_v17  ;;  %v598_v25 = vmul.f32 %v986_v51, %v986_v51 }
 0x12d   :  { %v623_v1 = vadd.f32 %v622_v21, %v596_v62  ;;  %522 = vst [vmem:[%s1238_s4 + $0x30] sm:$0xff] %v512_v24  ;;  %v595_v45 = vmul.f32 %v467_v17, %v467_v17  ;;  %v514_v29 = vmax.f32 %v513_v27, %v1028_v18  ;;  %v597_v34 = vmul.f32 %v984_v48, %v984_v48 }
 0x12e   :  { %v561_v36 = vadd.f32 %v560_v28, %v993_v58  ;;  %554 = vst [vmem:[%s1239_s5 + $0x30] sm:$0xff] %v544_v30  ;;  %v574_v56 = vadd.f32 %v573_v32, %v984_v48  ;;  %v546_v51 = vmin.f32 %v545_v31, %v1028_v18  ;;  %v600_v37 = vmul.f32 %v993_v58, %v993_v58 }
 0x12f   :  { %v624_v38 = vadd.f32 %v623_v1, %v598_v25  ;;  %v637_v40 = vadd.f32 %v636_v63, %v595_v45  ;;  %v515_v41 = vmax.f32 %v514_v29, %v1129_v23  ;;  %v599_v46 = vmul.f32 %v988_v54, %v988_v54 }
 0x130   :  { %v562_v42 = vadd.f32 %v561_v36, %v1003_v0  ;;  %v575_v44 = vadd.f32 %v574_v56, %v988_v54  ;;  %v547_v59 = vmin.f32 %v546_v51, %v1129_v23  ;;  %v602_v48 = vmul.f32 %v1003_v0, %v1003_v0 }
 0x131   :  { %v625_v47 = vadd.f32 %v624_v38, %v600_v37  ;;  %v638_v50 = vadd.f32 %v637_v40, %v597_v34  ;;  %523 = vst [vmem:[%s1238_s4 + $0x38] sm:$0xff] %v515_v41  ;;  %v604_v54 = vmul.f32 %v1010_v4, %v1010_v4  ;;  %v601_v0 = vmul.f32 %v998_v61, %v998_v61 }
 0x132   :  { %v563_v58 = vadd.f32 %v562_v42, %v1010_v4  ;;  %v576_v53 = vadd.f32 %v575_v44, %v998_v61  ;;  %555 = vst [vmem:[%s1239_s5 + $0x38] sm:$0xff] %v547_v59  ;;  %v606_v63 = vmul.f32 %v1014_v8, %v1014_v8  ;;  %v603_v52 = vmul.f32 %v1008_v2, %v1008_v2 }
 0x133   :  { %v626_v49 = vadd.f32 %v625_v47, %v602_v48  ;;  %v639_v55 = vadd.f32 %v638_v50, %v599_v46  ;;  %v605_v61 = vmul.f32 %v1012_v6, %v1012_v6  ;;  %v608_v9 = vmul.f32 %v1019_v12, %v1019_v12 }
 0x134   :  { %v564_v57 = vadd.f32 %v563_v58, %v1014_v8  ;;  %v577_v60 = vadd.f32 %v576_v53, %v1008_v2  ;;  %v607_v2 = vmul.f32 %v1016_v10, %v1016_v10  ;;  %v610_v19 = vmul.f32 %v1025_v16, %v1025_v16 }
 0x135   :  { %v627_v3 = vadd.f32 %v626_v49, %v604_v54  ;;  %v640_v5 = vadd.f32 %v639_v55, %v601_v0  ;;  %v612_v24 = vmul.f32 %v1030_v22, %v1030_v22  ;;  %v614_v31 = vmul.f32 %v1040_v39, %v1040_v39 }
 0x136   :  { %v565_v7 = vadd.f32 %v564_v57, %v1019_v12  ;;  %v578_v4 = vadd.f32 %v577_v60, %v1012_v6  ;;  %v609_v12 = vmul.f32 %v1022_v14, %v1022_v14  ;;  %v616_v45 = vmul.f32 %v1074_v33, %v1074_v33 }
 0x137   :  { %v628_v11 = vadd.f32 %v627_v3, %v606_v63  ;;  %v641_v15 = vadd.f32 %v640_v5, %v603_v52  ;;  %v618_v56 = vmul.f32 %v1116_v13, %v1116_v13 }
 0x138   :  { %v566_v17 = vadd.f32 %v565_v7, %v1025_v16  ;;  %v579_v8 = vadd.f32 %v578_v4, %v1016_v10  ;;  %v611_v16 = vmul.f32 %v1028_v18, %v1028_v18 }
 0x139   :  { %v629_v20 = vadd.f32 %v628_v11, %v608_v9  ;;  %v642_v62 = vadd.f32 %v641_v15, %v605_v61 }
 0x13a   :  { %v567_v21 = vadd.f32 %v566_v17, %v1030_v22  ;;  %v580_v6 = vadd.f32 %v579_v8, %v1022_v14  ;;  %v613_v22 = vmul.f32 %v1032_v26, %v1032_v26 }
 0x13b   :  { %v630_v27 = vadd.f32 %v629_v20, %v610_v19  ;;  %v643_v28 = vadd.f32 %v642_v62, %v607_v2 }
 0x13c   :  { %v568_v30 = vadd.f32 %v567_v21, %v1040_v39  ;;  %v581_v10 = vadd.f32 %v580_v6, %v1028_v18  ;;  %v615_v39 = vmul.f32 %v1044_v43, %v1044_v43 }
 0x13d   :  { %v631_v32 = vadd.f32 %v630_v27, %v612_v24  ;;  %v644_v25 = vadd.f32 %v643_v28, %v609_v12 }
 0x13e   :  { %v569_v1 = vadd.f32 %v568_v30, %v1074_v33  ;;  %v582_v14 = vadd.f32 %v581_v10, %v1032_v26  ;;  %v617_v33 = vmul.f32 %v1085_v35, %v1085_v35 }
 0x13f   :  { %v632_v29 = vadd.f32 %v631_v32, %v614_v31  ;;  %v645_v34 = vadd.f32 %v644_v25, %v611_v16 }
 0x140   :  { %v570_v36 = vadd.f32 %v569_v1, %v1116_v13  ;;  %v583_v18 = vadd.f32 %v582_v14, %v1044_v43  ;;  %v619_v43 = vmul.f32 %v1129_v23, %v1129_v23 }
 0x141   :  { %v633_v51 = vadd.f32 %v632_v29, %v616_v45  ;;  %v646_v37 = vadd.f32 %v645_v34, %v613_v22 }
 0x142   :  { %586 = vst [vmem:[%s1240_s6] sm:$0xff] %v570_v36  ;;  %v584_v26 = vadd.f32 %v583_v18, %v1085_v35 }
 0x143   :  { %v634_v38 = vadd.f32 %v633_v51, %v618_v56  ;;  %v647_v40 = vadd.f32 %v646_v37, %v615_v39 }
 0x144   :  { %v585_v41 = vadd.f32 %v584_v26, %v1129_v23 }
 0x145   :  { %650 = vst [vmem:[%s1241_s7] sm:$0xff] %v634_v38  ;;  %v648_v13 = vadd.f32 %v647_v40, %v617_v33 }
 0x146   :  { %587 = vst [vmem:[%s1240_s6 + $0x8] sm:$0xff] %v585_v41 }
 0x147   :  { %v649_v42 = vadd.f32 %v648_v13, %v619_v43 }
 0x149   :  { %651 = vst [vmem:[%s1241_s7 + $0x8] sm:$0xff] %v649_v42 }

// kernel: dgcnn_forward.17
= control target key start
LH: loop header
LB: loop body
LE: loop exit
PB: predicated region body
PF: predicated region fallthrough
CT: control target
= control target key end

     0   :  { %s1068_s18 = smov 0   ;;  %s1070_s19 = smov 0   ;;  %s1214_s0 = inlined_call_operand.vmem [shape: bf16[2,16,512], index: 0, kind: input, shape index: {}]   ;;  %s1215_s1 = inlined_call_operand.vmem [shape: bf16[512,128], index: 1, kind: input, shape index: {}]   ;;  %s1216_s2 = inlined_call_operand.vmem [shape: f32[2,8,128], index: 2, kind: output, shape index: {0}]   ;;  %s1217_s3 = inlined_call_operand.vmem [shape: f32[2,8,128], index: 3, kind: output, shape index: {1}]   ;;  %s1218_s4 = inlined_call_operand.vmem [shape: f32[2,8,128], index: 4, kind: output, shape index: {2}]   ;;  %s1219_s5 = inlined_call_operand.vmem [shape: f32[2,8,128], index: 5, kind: output, shape index: {3}]  }
   0x1   :  { %s1072_s20 = smov 0  }
   0x2 LB: > { %s28_s21 = sadd.s32 1, %s1032_s19  ;;  %p862_p0 = scmp.ge.s32.totalorder %s1036_s20, 1  ;;  %s1036_s20 = sphi %s1072_s20, %s16_s20   ;;  %s1032_s19 = sphi %s1070_s19, %s1221_s19   ;;  %s1028_s18 = sphi %s1068_s18, %s1220_s18  }
   0x3   : > { %p30_p1 = scmp.ge.s32.totalorder %s28_s21, 2  ;;  %p214_p2 = scmp.lt.s32.totalorder %s1036_s20, 3 }
   0x5   : > { %s1223_s21 = smov (%p30_p1, %s28_s21), 0  ;;  %p215_p3 = pnand %p862_p0, %p214_p2 }
   0x6   : > { %v976_v0 = vld [vmem:[%s1215_s1 + $0x40] sm:$0xff] (!%p215_p3)   ;;  %v980_v4 = vld [vmem:[%s1215_s1 + $0x48] sm:$0xff] (!%p215_p3)   ;;  %v984_v8 = vld [vmem:[%s1215_s1 + $0x50] sm:$0xff] (!%p215_p3)   ;;  %p259_p4 = scmp.lt.s32.totalorder (!%p215_p3), %s1028_s18, 1 }
   0x7   : > { %218 = sbr.rel (%p215_p3) target bundleno = 265 (0x109), region = 28  ;;  %v977_v1 = vld [vmem:[%s1215_s1 + $0xc0] sm:$0xff] (!%p215_p3)   ;;  %908 = vmatprep.subr.bf16.mxu0 (!%p215_p3), %v976_v0  ;;  %v981_v5 = vld [vmem:[%s1215_s1 + $0xc8] sm:$0xff] (!%p215_p3)   ;;  %v985_v9 = vld [vmem:[%s1215_s1 + $0xd0] sm:$0xff] (!%p215_p3)  }
   0x8   : > { %v978_v2 = vld [vmem:[%s1215_s1] sm:$0xff] (!%p215_p3)   ;;  %930 = vmatprep.subr.bf16.mxu1 (!%p215_p3), %v977_v1  ;;  %v982_v6 = vld [vmem:[%s1215_s1 + $0x8] sm:$0xff] (!%p215_p3)   ;;  %v986_v10 = vld [vmem:[%s1215_s1 + $0x10] sm:$0xff] (!%p215_p3)  }
   0x9   : > { %v979_v3 = vld [vmem:[%s1215_s1 + $0x80] sm:$0xff] (!%p215_p3)   ;;  %909 = vmatpush3.bf16.msra.mxu0 (!%p215_p3), %v978_v2  ;;  %v983_v7 = vld [vmem:[%s1215_s1 + $0x88] sm:$0xff] (!%p215_p3)   ;;  %v987_v11 = vld [vmem:[%s1215_s1 + $0x90] sm:$0xff] (!%p215_p3)  }
   0xa   : > { %931 = vmatpush3.bf16.msra.mxu1 (!%p215_p3), %v979_v3  ;;  %910 = vmatprep.subr.bf16.mxu0 (!%p215_p3), %v980_v4  ;;  %v988_v12 = vld [vmem:[%s1215_s1 + $0x58] sm:$0xff] (!%p215_p3)   ;;  %v992_v16 = vld [vmem:[%s1215_s1 + $0x60] sm:$0xff] (!%p215_p3)   ;;  %v996_v20 = vld [vmem:[%s1215_s1 + $0x68] sm:$0xff] (!%p215_p3)  }
   0xb   : > { %932 = vmatprep.subr.bf16.mxu1 (!%p215_p3), %v981_v5  ;;  %v989_v13 = vld [vmem:[%s1215_s1 + $0xd8] sm:$0xff] (!%p215_p3)   ;;  %v993_v17 = vld [vmem:[%s1215_s1 + $0xe0] sm:$0xff] (!%p215_p3)   ;;  %v997_v21 = vld [vmem:[%s1215_s1 + $0xe8] sm:$0xff] (!%p215_p3)  }
   0xc   : > { %v990_v14 = vld [vmem:[%s1215_s1 + $0x18] sm:$0xff] (!%p215_p3)   ;;  %v994_v18 = vld [vmem:[%s1215_s1 + $0x20] sm:$0xff] (!%p215_p3)   ;;  %v998_v22 = vld [vmem:[%s1215_s1 + $0x28] sm:$0xff] (!%p215_p3)  }
   0xd   : > { %911 = vmatpush3.bf16.msra.mxu0 (!%p215_p3), %v982_v6  ;;  %v991_v15 = vld [vmem:[%s1215_s1 + $0x98] sm:$0xff] (!%p215_p3)   ;;  %v995_v19 = vld [vmem:[%s1215_s1 + $0xa0] sm:$0xff] (!%p215_p3)   ;;  %v999_v23 = vld [vmem:[%s1215_s1 + $0xa8] sm:$0xff] (!%p215_p3)  }
   0xe   : > { %933 = vmatpush3.bf16.msra.mxu1 %v983_v7  ;;  %912 = vmatprep.subr.bf16.mxu0 %v984_v8  ;;  %s1225_s18 = smov (!%p259_p4, %s1028_s18), 1  ;;  %v1000_v24 = vld [vmem:[%s1215_s1 + $0x70] sm:$0xff]   ;;  %v1004_v28 = vld [vmem:[%s1215_s1 + $0x78] sm:$0xff]  }
   0xf   : > { %934 = vmatprep.subr.bf16.mxu1 %v985_v9  ;;  %v1001_v25 = vld [vmem:[%s1215_s1 + $0xf0] sm:$0xff]   ;;  %s907_s9 = sshll.u32 %s1225_s18, 5  ;;  %v1005_v29 = vld [vmem:[%s1215_s1 + $0xf8] sm:$0xff]   ;;  %s865_s27 = sshll.u32 %s1225_s18, 3 }
  0x10   : > { %v1002_v26 = vld [vmem:[%s1215_s1 + $0x30] sm:$0xff]   ;;  %s267_s22 = scalar_lea.vmem %s1214_s0, %s907_s9  ;;  %v1006_v30 = vld [vmem:[%s1215_s1 + $0x38] sm:$0xff]   ;;  %s272_s30 = scalar_lea.vmem %s1216_s2, %s865_s27 }
  0x11   : > { %913 = vmatpush3.bf16.msra.mxu0 %v986_v10  ;;  %v1003_v27 = vld [vmem:[%s1215_s1 + $0xb0] sm:$0xff]   ;;  %v1007_v31 = vld [vmem:[%s1215_s1 + $0xb8] sm:$0xff]   ;;  %s276_s8 = scalar_lea.vmem %s1217_s3, %s865_s27  ;;  %s280_s11 = scalar_lea.vmem %s1218_s4, %s865_s27 }
  0x12   : > { %935 = vmatpush3.bf16.msra.mxu1 %v987_v11  ;;  %914 = vmatprep.subr.bf16.mxu0 %v988_v12  ;;  %v1008_v32 = vld [vmem:[%s267_s22] ss:$16 sps:$4 sm:$0xff]   ;;  %v1010_v33 = vld [vmem:[%s267_s22 + $0x4] ss:$16 sps:$4 sm:$0xff]   ;;  %v1011_v34 = vld [vmem:[%s267_s22 + $0x8] ss:$16 sps:$4 sm:$0xff]   ;;  %s284_s13 = scalar_lea.vmem %s1219_s5, %s865_s27 }
  0x13   : > { %936 = vmatprep.subr.bf16.mxu1 %v989_v13  ;;  %v1013_v35 = vld [vmem:[%s267_s22 + $0xc] ss:$16 sps:$4 sm:$0xff]   ;;  %598 = vmatprep.mubr.bf16.mxu0 %v1010_v33 }
  0x14   : > { %639 = vmatprep.mubr.bf16.mxu1 %v1013_v35 }
  0x15   : > { %915 = vmatpush3.bf16.msra.mxu0 %v990_v14 }
  0x16   : > { %937 = vmatpush3.bf16.msra.mxu1 %v991_v15  ;;  %916 = vmatprep.subr.bf16.mxu0 %v992_v16 }
  0x17   : > { %938 = vmatprep.subr.bf16.mxu1 %v993_v17 }
  0x19   : > { %917 = vmatpush3.bf16.msra.mxu0 %v994_v18 }
  0x1a   : > { %939 = vmatpush3.bf16.msra.mxu1 %v995_v19  ;;  %918 = vmatprep.subr.bf16.mxu0 %v996_v20 }
  0x1b   : > { %940 = vmatprep.subr.bf16.mxu1 %v997_v21 }
  0x1d   : > { %919 = vmatpush3.bf16.msra.mxu0 %v998_v22 }
  0x1e   : > { %941 = vmatpush3.bf16.msra.mxu1 %v999_v23  ;;  %920 = vmatprep.subr.bf16.mxu0 %v1000_v24 }
  0x1f   : > { %942 = vmatprep.subr.bf16.mxu1 %v1001_v25 }
  0x21   : > { %921 = vmatpush3.bf16.msra.mxu0 %v1002_v26 }
  0x22   : > { %943 = vmatpush3.bf16.msra.mxu1 %v1003_v27  ;;  %922 = vmatprep.subr.bf16.mxu0 %v1004_v28 }
  0x23   : > { %944 = vmatprep.subr.bf16.mxu1 %v1005_v29 }
  0x25   : > { %923 = vmatpush3.bf16.msra.mxu0 %v1006_v30 }
  0x26   : > { %945 = vmatpush3.bf16.msra.mxu1 %v1007_v31 }
  0x28   : > { %599 = vmatmul.mubr.bf16.vlgmr.msra.gmra.mrb[0].mxu0 %v1008_v32 }
  0x29   : > { %640 = vmatmul.mubr.bf16.vlgmr.msra.gmra.mrb[0].mxu1 %v1011_v34 }
  0xfb   : > { %v924_v36 = vpop.f32.mrb[0].mxu0 }
  0xfc   : > { %v946_v37 = vpop.f32.mrb[0].mxu1  ;;  %v925_v38 = vpop.f32.mrb[1].mxu0 }
  0xfd   : > { %v926_v39 = vadd.f32 %v925_v38, %v924_v36  ;;  %v947_v40 = vpop.f32.mrb[1].mxu1  ;;  %v927_v41 = vpop.f32.mrb[2].mxu0 }
  0xfe   : > { %v948_v42 = vadd.f32 %v947_v40, %v946_v37  ;;  %v949_v43 = vpop.f32.mrb[2].mxu1  ;;  %v928_v44 = vpop.f32.mrb[3].mxu0 }
  0xff   : > { %v929_v45 = vadd.f32 %v928_v44, %v927_v41  ;;  %v950_v46 = vpop.f32.mrb[3].mxu1 }
 0x100   : > { %v642_v47 = vadd.f32 %v948_v42, %v926_v39  ;;  %v951_v48 = vadd.f32 %v950_v46, %v949_v43 }
 0x102   : > { %v645_v49 = vadd.f32 %v951_v48, %v929_v45  ;;  %v668_v50 = vmul.f32 %v642_v47, %v642_v47 }
 0x104   : > { %v665_v51 = vmax.f32 %v642_v47, %v645_v49  ;;  %v666_v52 = vmin.f32 %v642_v47, %v645_v49  ;;  %v667_v53 = vadd.f32 %v645_v49, %v642_v47  ;;  %v669_v54 = vmul.f32 %v645_v49, %v645_v49 }
 0x106   : > { %v670_v55 = vadd.f32 %v669_v54, %v668_v50  ;;  %675 = vst [vmem:[%s272_s30] sm:$0xff] %v665_v51  ;;  %676 = vst [vmem:[%s276_s8] sm:$0xff] %v666_v52 }
 0x107   : > { %677 = vst [vmem:[%s280_s11] sm:$0xff] %v667_v53 }
 0x108   : > { %678 = vst [vmem:[%s284_s13] sm:$0xff] %v670_v55 }
 0x109 PF: > { %s16_s20 = sadd.s32 1, %s1036_s20   ;;  %s1220_s18 = smov %s1032_s19 }
 0x10a   : > { %p13_p5 = scmp.ge.s32.totalorder %s16_s20, 4   ;;  %s1221_s19 = smov %s1223_s21 }
 0x10c   :  { %15 = sbr.rel (!%p13_p5) target bundleno = 2 (0x2), region = 102 }

</bundles_post_ra>
